<compile_context>
chip_gen: v6e
topology: v6e:2x2x1
jax: 0.10.0
libtpu: 0.0.40
codegen_flags: <defaults>
</compile_context>

<pallas_src>
import functools

import jax
import jax.numpy as jnp
from jax import lax
from jax.experimental import pallas as pl
from jax.experimental.pallas import tpu as pltpu


# --------------------- in-kernel math helpers (on values) -------------------

def _mm(a, b):
    """MXU matmul: bf16 operands, f32 accumulation."""
    return jnp.dot(a.astype(jnp.bfloat16), b.astype(jnp.bfloat16),
                   preferred_element_type=jnp.float32)


def _layernorm(x, g, b, eps):
    x = x.astype(jnp.float32)
    mu = jnp.mean(x, axis=-1, keepdims=True)
    var = jnp.mean(jnp.square(x - mu), axis=-1, keepdims=True)
    return (x - mu) * lax.rsqrt(var + eps) * g + b


def _softmax_rows(s):
    s = s - jnp.max(s, axis=-1, keepdims=True)
    p = jnp.exp(s)
    return p * pl.reciprocal(jnp.sum(p, axis=-1, keepdims=True), approx=True)


def _mha(x_q, x_kv, wq_ref, bq_ref, wk_ref, bk_ref, wv_ref, bv_ref,
         wo_ref, bo, nh):
    """Multi-head attention on values already resident in VMEM.

    Per-head weights are indexed on the leading `nh` axis of the refs
    (static Python loop) so no lane-dim slicing is ever needed."""
    Lq = x_q.shape[0]
    D = wo_ref.shape[2]
    hd = wq_ref.shape[2]
    scale = 1.0 / (hd ** 0.5)
    out = jnp.zeros((Lq, D), jnp.float32)
    for h in range(nh):
        q = _mm(x_q, wq_ref[h]) + bq_ref[h]
        k = _mm(x_kv, wk_ref[h]) + bk_ref[h]
        v = _mm(x_kv, wv_ref[h]) + bv_ref[h]
        s = lax.dot_general(q.astype(jnp.bfloat16), k.astype(jnp.bfloat16),
                            (((1,), (1,)), ((), ())),
                            preferred_element_type=jnp.float32) * scale
        p = _softmax_rows(s)
        out = out + _mm(_mm(p, v), wo_ref[h])
    return out + bo


# ------------------------------ Pallas kernel --------------------------------

def _net_kernel(patches_ref, kb_ref,
                pe_w_ref, addend_ref,
                ln1_g_ref, ln1_b_ref,
                v_wq_ref, v_bq_ref, v_wk_ref, v_bk_ref, v_wv_ref, v_bv_ref,
                v_wo_ref, v_bo_ref,
                ln2_g_ref, ln2_b_ref,
                fc1_w_ref, fc1_b_ref, fc2_w_ref, fc2_b_ref,
                lnf_g_ref, lnf_b_ref,
                c_wq_ref, c_bq_ref, c_wk_ref, c_bk_ref, c_wv_ref, c_bv_ref,
                c_wo_ref, c_bo_ref, c_ln_g_ref, c_ln_b_ref,
                hv_w_ref, hv_b_ref, ht_w_ref, ht_b_ref,
                hwv_ref, hwt_ref, hb_ref,
                out_ref, *, nh):
    """Fully fused Net forward for one batch element (one grid step):
    ViT (patch embed + one pre-norm encoder block + final LN) -> CLS feature
    -> CrossLayer cross-attention + residual + LN -> classifier heads.
    Every intermediate stays in VMEM / vregs."""
    # ---- ViT: patch embedding + CLS / positional addend -------------------
    # row 0 of `patches` is a zero "CLS slot" and `addend` already carries
    # cls+pos[0] / pe_b+pos[1:], so one matmul builds the full [Lt, D] tokens.
    x = _mm(patches_ref[0], pe_w_ref[...]) + addend_ref[...]

    # attention sub-block (pre-norm)
    h = _layernorm(x, ln1_g_ref[...], ln1_b_ref[...], 1e-6)
    x = x + _mha(h, h, v_wq_ref, v_bq_ref, v_wk_ref, v_bk_ref,
                 v_wv_ref, v_bv_ref, v_wo_ref, v_bo_ref[...], nh)

    # MLP sub-block (pre-norm)
    h = _layernorm(x, ln2_g_ref[...], ln2_b_ref[...], 1e-6)
    # TODO(synk): torch.nn.GELU defaults to exact erf; tanh approximation used
    # here because it lowers cleanly to the EUP.
    h = jax.nn.gelu(_mm(h, fc1_w_ref[...]) + fc1_b_ref[...], approximate=True)
    x = x + _mm(h, fc2_w_ref[...]) + fc2_b_ref[...]

    # final LayerNorm; vision_net.head = Identity -> CLS token feature
    x = _layernorm(x, lnf_g_ref[...], lnf_b_ref[...], 1e-6)
    vit_f = x[0:1, :]                                   # [1, D]

    # ---- CrossLayer: cross-attention (query=vision, kv=knowledge) ---------
    # TODO(synk): exact CrossLayer architecture not in source file; assumed
    # MHA(query=vision, key/value=knowledge) + residual + LayerNorm.
    kb = kb_ref[0].astype(jnp.float32)                  # [Lk, D]
    att = _mha(vit_f, kb, c_wq_ref, c_bq_ref, c_wk_ref, c_bk_ref,
               c_wv_ref, c_bv_ref, c_wo_ref, c_bo_ref[...], nh)
    attened = _layernorm(vit_f + att, c_ln_g_ref[...], c_ln_b_ref[...], 1e-12)
    # dropout(p=cfg.vkac_dropout) is identity in eval mode

    # ---- classifier heads --------------------------------------------------
    hv = _mm(vit_f, hv_w_ref[...]) + hv_b_ref[...]       # head_vision(vit_f)
    ht = _mm(attened, ht_w_ref[...]) + ht_b_ref[...]     # head_text(attened)
    # head(concat([hv, ht])) realised as split-weight matmuls (no concat)
    logits = _mm(hv, hwv_ref[...]) + _mm(ht, hwt_ref[...]) + hb_ref[...]
    out_ref[0] = logits.astype(out_ref.dtype)


# ------------------------------ BlockSpec glue -------------------------------

def _const_index_map(ndim):
    zeros = (0,) * ndim
    return lambda b: zeros


def _batch_index_map(ndim):
    tail = (0,) * (ndim - 1)
    return lambda b: (b,) + tail


def _rep_spec(x):
    """Whole-array block, replicated (constant block index) across the grid."""
    return pl.BlockSpec(tuple(x.shape), _const_index_map(x.ndim))


def _batch_spec(x):
    """Split along the leading (batch) axis; trailing dims cover full array."""
    return pl.BlockSpec((1,) + tuple(x.shape[1:]), _batch_index_map(x.ndim))


def _attn_weight_list(a, nh):
    """Split fused [D, D] projections into per-head tensors with a leading
    `nh` axis so the kernel never slices the lane dimension."""
    D = a["wq"].shape[0]
    hd = D // nh

    def cols(w):                       # [D, D] -> [nh, D, hd]
        return w.reshape(D, nh, hd).transpose(1, 0, 2)

    def bias(b):                       # [D] -> [nh, 1, hd]
        return b.reshape(nh, 1, hd)

    return [cols(a["wq"]), bias(a["bq"]),
            cols(a["wk"]), bias(a["bk"]),
            cols(a["wv"]), bias(a["bv"]),
            a["wo"].reshape(nh, hd, D), a["bo"].reshape(1, D)]


# ------------------------------ forward glue ---------------------------------

def net_forward(params, img, kb_context, kb_f, *, nh, patch):
    """Forward pass of Net (targets=None path -> returns concat_logits).
    Single fused pallas_call over grid=(batch,)."""
    B, C, H, W = img.shape
    nP = (H // patch) * (W // patch)
    Lt = nP + 1
    p = params["vit"]
    c = params["cross"]
    D = p["pe_w"].shape[1]
    Pd = C * patch * patch
    Dh = params["head_vision_w"].shape[1]
    ncls = params["head_w"].shape[1]

    # unfold patches (== Conv2d with kernel == stride == patch), then prepend
    # a zero "CLS slot" row so the CLS token rides through the same matmul.
    x = img.reshape(B, C, H // patch, patch, W // patch, patch)
    x = x.transpose(0, 2, 4, 1, 3, 5).reshape(B, nP, Pd)
    patches = jnp.concatenate([jnp.zeros((B, 1, Pd), x.dtype), x], axis=1)

    # additive term: row 0 = cls + pos[0]; rows 1.. = pe_b + pos[1:]
    pos = p["pos"].reshape(Lt, D)
    addend = jnp.concatenate(
        [p["cls"].reshape(1, D) + pos[0:1],
         p["pe_b"].reshape(1, D) + pos[1:]], axis=0)

    weights = ([p["pe_w"], addend,
                p["ln1_g"].reshape(1, D), p["ln1_b"].reshape(1, D)]
               + _attn_weight_list(p["attn"], nh)
               + [p["ln2_g"].reshape(1, D), p["ln2_b"].reshape(1, D),
                  p["fc1_w"], p["fc1_b"].reshape(1, -1),
                  p["fc2_w"], p["fc2_b"].reshape(1, D),
                  p["lnf_g"].reshape(1, D), p["lnf_b"].reshape(1, D)]
               + _attn_weight_list(c["attn"], nh)
               + [c["ln_g"].reshape(1, D), c["ln_b"].reshape(1, D),
                  params["head_vision_w"], params["head_vision_b"].reshape(1, Dh),
                  params["head_text_w"], params["head_text_b"].reshape(1, Dh),
                  params["head_w"][:Dh], params["head_w"][Dh:],
                  params["head_b"].reshape(1, ncls)])

    out = pl.pallas_call(
        functools.partial(_net_kernel, nh=nh),
        out_shape=jax.ShapeDtypeStruct((B, 1, ncls), jnp.float32),
        grid=(B,),
        in_specs=[_batch_spec(patches), _batch_spec(kb_context)]
                 + [_rep_spec(w) for w in weights],
        out_specs=pl.BlockSpec((1, 1, ncls), _batch_index_map(3)),
        compiler_params=pltpu.CompilerParams(dimension_semantics=("parallel",)),
    )(patches, kb_context, *weights)

    # TODO(synk): KnowBERT + KnowBertBatchifier cannot run in-script; their
    # outputs (kb_context = contextual_embeddings, kb_f = pooled_output) are
    # passed in as synthetic inputs.
    del kb_f   # unused: use_reslink=False and concat_knowbert_last_feature=False
    return out.reshape(B, ncls)


# ------------------------------ parameter init -------------------------------

def init_params(key, *, C, patch, img_size, D, nh, mlp, Dh, num_classes):
    keys = iter(jax.random.split(key, 64))

    def w(shape, scale=0.02):
        return (scale * jax.random.normal(next(keys), shape)).astype(jnp.float32)

    def zeros(n):
        return jnp.zeros((n,), jnp.float32)

    def attn_params():
        return dict(wq=w((D, D)), bq=zeros(D), wk=w((D, D)), bk=zeros(D),
                    wv=w((D, D)), bv=zeros(D), wo=w((D, D)), bo=zeros(D))

    nP = (img_size // patch) ** 2
    patch_dim = C * patch * patch
    vit = dict(
        pe_w=w((patch_dim, D)), pe_b=zeros(D),
        cls=w((1, 1, D)), pos=w((1, nP + 1, D)),
        ln1_g=jnp.ones((D,), jnp.float32), ln1_b=zeros(D),
        attn=attn_params(),
        ln2_g=jnp.ones((D,), jnp.float32), ln2_b=zeros(D),
        fc1_w=w((D, mlp)), fc1_b=zeros(mlp),
        fc2_w=w((mlp, D)), fc2_b=zeros(D),
        lnf_g=jnp.ones((D,), jnp.float32), lnf_b=zeros(D),
    )
    cross = dict(attn=attn_params(),
                 ln_g=jnp.ones((D,), jnp.float32), ln_b=zeros(D))
    # TODO(synk): generate_head() is external; heads assumed to be Linear layers.
    return dict(
        vit=vit, cross=cross,
        head_vision_w=w((D, Dh)), head_vision_b=zeros(Dh),
        head_text_w=w((D, Dh)), head_text_b=zeros(Dh),
        head_w=w((2 * Dh, num_classes)), head_b=zeros(num_classes),
    )


# ---------------------------------- main -------------------------------------

if __name__ == "__main__":
    B, C, IMG = 2, 3, 32
    PATCH, D, NH, MLP, DH, NUM_CLASS = 8, 32, 2, 64, 32, 5
    L_KB = 8                                                  # KnowBERT seq len

    key = jax.random.PRNGKey(0)
    kp, kimg, kctx, kpool = jax.random.split(key, 4)

    params = init_params(kp, C=C, patch=PATCH, img_size=IMG, D=D, nh=NH,
                         mlp=MLP, Dh=DH, num_classes=NUM_CLASS)

    img = jax.random.normal(kimg, (B, C, IMG, IMG), jnp.float32)          # NCHW
    kb_context = jax.random.normal(kctx, (B, L_KB, D), jnp.float32)       # contextual_embeddings
    kb_f = jax.random.normal(kpool, (B, D), jnp.float32)                  # pooled_output

    fwd = jax.jit(functools.partial(net_forward, nh=NH, patch=PATCH))
    logits = fwd(params, img, kb_context, kb_f)
    jax.block_until_ready(logits)
    assert logits.shape == (B, NUM_CLASS) and logits.dtype == jnp.float32
    print("KERNEL_OK")
</pallas_src>

<mosaic_0001>
module attributes {stable_mosaic.version = 11 : i64} {
  func.func @_net_kernel(%arg0: i32, %arg1: memref<1x17x192xf32, #tpu.memory_space<vmem>>, %arg2: memref<1x8x32xf32, #tpu.memory_space<vmem>>, %arg3: memref<192x32xf32, #tpu.memory_space<vmem>>, %arg4: memref<17x32xf32, #tpu.memory_space<vmem>>, %arg5: memref<1x32xf32, #tpu.memory_space<vmem>>, %arg6: memref<1x32xf32, #tpu.memory_space<vmem>>, %arg7: memref<2x32x16xf32, #tpu.memory_space<vmem>>, %arg8: memref<2x1x16xf32, #tpu.memory_space<vmem>>, %arg9: memref<2x32x16xf32, #tpu.memory_space<vmem>>, %arg10: memref<2x1x16xf32, #tpu.memory_space<vmem>>, %arg11: memref<2x32x16xf32, #tpu.memory_space<vmem>>, %arg12: memref<2x1x16xf32, #tpu.memory_space<vmem>>, %arg13: memref<2x16x32xf32, #tpu.memory_space<vmem>>, %arg14: memref<1x32xf32, #tpu.memory_space<vmem>>, %arg15: memref<1x32xf32, #tpu.memory_space<vmem>>, %arg16: memref<1x32xf32, #tpu.memory_space<vmem>>, %arg17: memref<32x64xf32, #tpu.memory_space<vmem>>, %arg18: memref<1x64xf32, #tpu.memory_space<vmem>>, %arg19: memref<64x32xf32, #tpu.memory_space<vmem>>, %arg20: memref<1x32xf32, #tpu.memory_space<vmem>>, %arg21: memref<1x32xf32, #tpu.memory_space<vmem>>, %arg22: memref<1x32xf32, #tpu.memory_space<vmem>>, %arg23: memref<2x32x16xf32, #tpu.memory_space<vmem>>, %arg24: memref<2x1x16xf32, #tpu.memory_space<vmem>>, %arg25: memref<2x32x16xf32, #tpu.memory_space<vmem>>, %arg26: memref<2x1x16xf32, #tpu.memory_space<vmem>>, %arg27: memref<2x32x16xf32, #tpu.memory_space<vmem>>, %arg28: memref<2x1x16xf32, #tpu.memory_space<vmem>>, %arg29: memref<2x16x32xf32, #tpu.memory_space<vmem>>, %arg30: memref<1x32xf32, #tpu.memory_space<vmem>>, %arg31: memref<1x32xf32, #tpu.memory_space<vmem>>, %arg32: memref<1x32xf32, #tpu.memory_space<vmem>>, %arg33: memref<32x32xf32, #tpu.memory_space<vmem>>, %arg34: memref<1x32xf32, #tpu.memory_space<vmem>>, %arg35: memref<32x32xf32, #tpu.memory_space<vmem>>, %arg36: memref<1x32xf32, #tpu.memory_space<vmem>>, %arg37: memref<32x5xf32, #tpu.memory_space<vmem>>, %arg38: memref<32x5xf32, #tpu.memory_space<vmem>>, %arg39: memref<1x5xf32, #tpu.memory_space<vmem>>, %arg40: memref<1x1x5xf32, #tpu.memory_space<vmem>>) attributes {dimension_semantics = [#tpu.dimension_semantics<parallel>], iteration_bounds = array<i64: 2>, scalar_prefetch = 0 : i64, scratch_operands = 0 : i64, tpu.core_type = #tpu.core_type<tc>, window_params = [{transform_indices = @transform_0, window_bounds = array<i64: 1, 17, 192>}, {transform_indices = @transform_1, window_bounds = array<i64: 1, 8, 32>}, {pipeline_mode = #tpu.pipeline_mode<synchronous>, transform_indices = @transform_2, window_bounds = array<i64: 192, 32>}, {pipeline_mode = #tpu.pipeline_mode<synchronous>, transform_indices = @transform_3, window_bounds = array<i64: 17, 32>}, {pipeline_mode = #tpu.pipeline_mode<synchronous>, transform_indices = @transform_4, window_bounds = array<i64: 1, 32>}, {pipeline_mode = #tpu.pipeline_mode<synchronous>, transform_indices = @transform_5, window_bounds = array<i64: 1, 32>}, {pipeline_mode = #tpu.pipeline_mode<synchronous>, transform_indices = @transform_6, window_bounds = array<i64: 2, 32, 16>}, {pipeline_mode = #tpu.pipeline_mode<synchronous>, transform_indices = @transform_7, window_bounds = array<i64: 2, 1, 16>}, {pipeline_mode = #tpu.pipeline_mode<synchronous>, transform_indices = @transform_8, window_bounds = array<i64: 2, 32, 16>}, {pipeline_mode = #tpu.pipeline_mode<synchronous>, transform_indices = @transform_9, window_bounds = array<i64: 2, 1, 16>}, {pipeline_mode = #tpu.pipeline_mode<synchronous>, transform_indices = @transform_10, window_bounds = array<i64: 2, 32, 16>}, {pipeline_mode = #tpu.pipeline_mode<synchronous>, transform_indices = @transform_11, window_bounds = array<i64: 2, 1, 16>}, {pipeline_mode = #tpu.pipeline_mode<synchronous>, transform_indices = @transform_12, window_bounds = array<i64: 2, 16, 32>}, {pipeline_mode = #tpu.pipeline_mode<synchronous>, transform_indices = @transform_13, window_bounds = array<i64: 1, 32>}, {pipeline_mode = #tpu.pipeline_mode<synchronous>, transform_indices = @transform_14, window_bounds = array<i64: 1, 32>}, {pipeline_mode = #tpu.pipeline_mode<synchronous>, transform_indices = @transform_15, window_bounds = array<i64: 1, 32>}, {pipeline_mode = #tpu.pipeline_mode<synchronous>, transform_indices = @transform_16, window_bounds = array<i64: 32, 64>}, {pipeline_mode = #tpu.pipeline_mode<synchronous>, transform_indices = @transform_17, window_bounds = array<i64: 1, 64>}, {pipeline_mode = #tpu.pipeline_mode<synchronous>, transform_indices = @transform_18, window_bounds = array<i64: 64, 32>}, {pipeline_mode = #tpu.pipeline_mode<synchronous>, transform_indices = @transform_19, window_bounds = array<i64: 1, 32>}, {pipeline_mode = #tpu.pipeline_mode<synchronous>, transform_indices = @transform_20, window_bounds = array<i64: 1, 32>}, {pipeline_mode = #tpu.pipeline_mode<synchronous>, transform_indices = @transform_21, window_bounds = array<i64: 1, 32>}, {pipeline_mode = #tpu.pipeline_mode<synchronous>, transform_indices = @transform_22, window_bounds = array<i64: 2, 32, 16>}, {pipeline_mode = #tpu.pipeline_mode<synchronous>, transform_indices = @transform_23, window_bounds = array<i64: 2, 1, 16>}, {pipeline_mode = #tpu.pipeline_mode<synchronous>, transform_indices = @transform_24, window_bounds = array<i64: 2, 32, 16>}, {pipeline_mode = #tpu.pipeline_mode<synchronous>, transform_indices = @transform_25, window_bounds = array<i64: 2, 1, 16>}, {pipeline_mode = #tpu.pipeline_mode<synchronous>, transform_indices = @transform_26, window_bounds = array<i64: 2, 32, 16>}, {pipeline_mode = #tpu.pipeline_mode<synchronous>, transform_indices = @transform_27, window_bounds = array<i64: 2, 1, 16>}, {pipeline_mode = #tpu.pipeline_mode<synchronous>, transform_indices = @transform_28, window_bounds = array<i64: 2, 16, 32>}, {pipeline_mode = #tpu.pipeline_mode<synchronous>, transform_indices = @transform_29, window_bounds = array<i64: 1, 32>}, {pipeline_mode = #tpu.pipeline_mode<synchronous>, transform_indices = @transform_30, window_bounds = array<i64: 1, 32>}, {pipeline_mode = #tpu.pipeline_mode<synchronous>, transform_indices = @transform_31, window_bounds = array<i64: 1, 32>}, {pipeline_mode = #tpu.pipeline_mode<synchronous>, transform_indices = @transform_32, window_bounds = array<i64: 32, 32>}, {pipeline_mode = #tpu.pipeline_mode<synchronous>, transform_indices = @transform_33, window_bounds = array<i64: 1, 32>}, {pipeline_mode = #tpu.pipeline_mode<synchronous>, transform_indices = @transform_34, window_bounds = array<i64: 32, 32>}, {pipeline_mode = #tpu.pipeline_mode<synchronous>, transform_indices = @transform_35, window_bounds = array<i64: 1, 32>}, {pipeline_mode = #tpu.pipeline_mode<synchronous>, transform_indices = @transform_36, window_bounds = array<i64: 32, 5>}, {pipeline_mode = #tpu.pipeline_mode<synchronous>, transform_indices = @transform_37, window_bounds = array<i64: 32, 5>}, {pipeline_mode = #tpu.pipeline_mode<synchronous>, transform_indices = @transform_38, window_bounds = array<i64: 1, 5>}, {transform_indices = @transform_39, window_bounds = array<i64: 1, 1, 5>}]} {
    %c0 = arith.constant 0 : index
    %c0_0 = arith.constant 0 : index
    %c0_1 = arith.constant 0 : index
    %0 = vector.load %arg1[%c0, %c0_0, %c0_1] : memref<1x17x192xf32, #tpu.memory_space<vmem>>, vector<1x17x192xf32>
    %1 = vector.shape_cast %0 : vector<1x17x192xf32> to vector<17x192xf32>
    %c0_2 = arith.constant 0 : index
    %c0_3 = arith.constant 0 : index
    %2 = vector.load %arg3[%c0_2, %c0_3] : memref<192x32xf32, #tpu.memory_space<vmem>>, vector<192x32xf32>
    %3 = arith.truncf %1 : vector<17x192xf32> to vector<17x192xbf16>
    %4 = arith.truncf %2 : vector<192x32xf32> to vector<192x32xbf16>
    %cst = arith.constant dense<0.000000e+00> : vector<17x32xf32>
    %5 = tpu.matmul %3, %4, %cst {dimension_numbers = #tpu.dot_dimension_numbers<[1], [0], [0], [1], [0, 0, 1, 1], [], []>} : vector<17x192xbf16>, vector<192x32xbf16>, vector<17x32xf32> -> vector<17x32xf32>
    %c0_4 = arith.constant 0 : index
    %c0_5 = arith.constant 0 : index
    %6 = vector.load %arg4[%c0_4, %c0_5] : memref<17x32xf32, #tpu.memory_space<vmem>>, vector<17x32xf32>
    %7 = arith.addf %5, %6 : vector<17x32xf32>
    %c0_6 = arith.constant 0 : index
    %c0_7 = arith.constant 0 : index
    %8 = vector.load %arg5[%c0_6, %c0_7] : memref<1x32xf32, #tpu.memory_space<vmem>>, vector<1x32xf32>
    %c0_8 = arith.constant 0 : index
    %c0_9 = arith.constant 0 : index
    %9 = vector.load %arg6[%c0_8, %c0_9] : memref<1x32xf32, #tpu.memory_space<vmem>>, vector<1x32xf32>
    %cst_10 = arith.constant dense<0.000000e+00> : vector<17xf32>
    %10 = vector.multi_reduction <add>, %7, %cst_10 [1] : vector<17x32xf32> to vector<17xf32>
    %11 = vector.shape_cast %10 : vector<17xf32> to vector<17x1xf32>
    %cst_11 = arith.constant 3.200000e+01 : f32
    %12 = vector.broadcast %cst_11 : f32 to vector<17x1xf32>
    %13 = arith.divf %11, %12 : vector<17x1xf32>
    %14 = vector.broadcast %13 : vector<17x1xf32> to vector<17x32xf32>
    %15 = arith.subf %7, %14 : vector<17x32xf32>
    %16 = arith.mulf %15, %15 : vector<17x32xf32>
    %cst_12 = arith.constant dense<0.000000e+00> : vector<17xf32>
    %17 = vector.multi_reduction <add>, %16, %cst_12 [1] : vector<17x32xf32> to vector<17xf32>
    %18 = vector.shape_cast %17 : vector<17xf32> to vector<17x1xf32>
    %cst_13 = arith.constant 3.200000e+01 : f32
    %19 = vector.broadcast %cst_13 : f32 to vector<17x1xf32>
    %20 = arith.divf %18, %19 : vector<17x1xf32>
    %21 = vector.broadcast %13 : vector<17x1xf32> to vector<17x32xf32>
    %22 = arith.subf %7, %21 : vector<17x32xf32>
    %cst_14 = arith.constant 9.99999997E-7 : f32
    %23 = vector.broadcast %cst_14 : f32 to vector<17x1xf32>
    %24 = arith.addf %20, %23 : vector<17x1xf32>
    %25 = math.rsqrt %24 : vector<17x1xf32>
    %26 = vector.broadcast %25 : vector<17x1xf32> to vector<17x32xf32>
    %27 = arith.mulf %22, %26 : vector<17x32xf32>
    %28 = vector.broadcast %8 : vector<1x32xf32> to vector<17x32xf32>
    %29 = arith.mulf %27, %28 : vector<17x32xf32>
    %30 = vector.broadcast %9 : vector<1x32xf32> to vector<17x32xf32>
    %31 = arith.addf %29, %30 : vector<17x32xf32>
    %c0_15 = arith.constant 0 : index
    %c0_16 = arith.constant 0 : index
    %32 = vector.load %arg14[%c0_15, %c0_16] : memref<1x32xf32, #tpu.memory_space<vmem>>, vector<1x32xf32>
    %cst_17 = arith.constant 0.000000e+00 : f32
    %33 = vector.broadcast %cst_17 : f32 to vector<17x32xf32>
    %c0_18 = arith.constant 0 : index
    %c0_19 = arith.constant 0 : index
    %c0_20 = arith.constant 0 : index
    %34 = vector.load %arg7[%c0_18, %c0_19, %c0_20] : memref<2x32x16xf32, #tpu.memory_space<vmem>>, vector<1x32x16xf32>
    %35 = vector.shape_cast %34 : vector<1x32x16xf32> to vector<32x16xf32>
    %36 = arith.truncf %31 : vector<17x32xf32> to vector<17x32xbf16>
    %37 = arith.truncf %35 : vector<32x16xf32> to vector<32x16xbf16>
    %cst_21 = arith.constant dense<0.000000e+00> : vector<17x16xf32>
    %38 = tpu.matmul %36, %37, %cst_21 {dimension_numbers = #tpu.dot_dimension_numbers<[1], [0], [0], [1], [0, 0, 1, 1], [], []>} : vector<17x32xbf16>, vector<32x16xbf16>, vector<17x16xf32> -> vector<17x16xf32>
    %c0_22 = arith.constant 0 : index
    %c0_23 = arith.constant 0 : index
    %c0_24 = arith.constant 0 : index
    %39 = vector.load %arg8[%c0_22, %c0_23, %c0_24] : memref<2x1x16xf32, #tpu.memory_space<vmem>>, vector<1x1x16xf32>
    %40 = vector.shape_cast %39 : vector<1x1x16xf32> to vector<1x16xf32>
    %41 = vector.broadcast %40 : vector<1x16xf32> to vector<17x16xf32>
    %42 = arith.addf %38, %41 : vector<17x16xf32>
    %c0_25 = arith.constant 0 : index
    %c0_26 = arith.constant 0 : index
    %c0_27 = arith.constant 0 : index
    %43 = vector.load %arg9[%c0_25, %c0_26, %c0_27] : memref<2x32x16xf32, #tpu.memory_space<vmem>>, vector<1x32x16xf32>
    %44 = vector.shape_cast %43 : vector<1x32x16xf32> to vector<32x16xf32>
    %45 = arith.truncf %31 : vector<17x32xf32> to vector<17x32xbf16>
    %46 = arith.truncf %44 : vector<32x16xf32> to vector<32x16xbf16>
    %cst_28 = arith.constant dense<0.000000e+00> : vector<17x16xf32>
    %47 = tpu.matmul %45, %46, %cst_28 {dimension_numbers = #tpu.dot_dimension_numbers<[1], [0], [0], [1], [0, 0, 1, 1], [], []>} : vector<17x32xbf16>, vector<32x16xbf16>, vector<17x16xf32> -> vector<17x16xf32>
    %c0_29 = arith.constant 0 : index
    %c0_30 = arith.constant 0 : index
    %c0_31 = arith.constant 0 : index
    %48 = vector.load %arg10[%c0_29, %c0_30, %c0_31] : memref<2x1x16xf32, #tpu.memory_space<vmem>>, vector<1x1x16xf32>
    %49 = vector.shape_cast %48 : vector<1x1x16xf32> to vector<1x16xf32>
    %50 = vector.broadcast %49 : vector<1x16xf32> to vector<17x16xf32>
    %51 = arith.addf %47, %50 : vector<17x16xf32>
    %c0_32 = arith.constant 0 : index
    %c0_33 = arith.constant 0 : index
    %c0_34 = arith.constant 0 : index
    %52 = vector.load %arg11[%c0_32, %c0_33, %c0_34] : memref<2x32x16xf32, #tpu.memory_space<vmem>>, vector<1x32x16xf32>
    %53 = vector.shape_cast %52 : vector<1x32x16xf32> to vector<32x16xf32>
    %54 = arith.truncf %31 : vector<17x32xf32> to vector<17x32xbf16>
    %55 = arith.truncf %53 : vector<32x16xf32> to vector<32x16xbf16>
    %cst_35 = arith.constant dense<0.000000e+00> : vector<17x16xf32>
    %56 = tpu.matmul %54, %55, %cst_35 {dimension_numbers = #tpu.dot_dimension_numbers<[1], [0], [0], [1], [0, 0, 1, 1], [], []>} : vector<17x32xbf16>, vector<32x16xbf16>, vector<17x16xf32> -> vector<17x16xf32>
    %c0_36 = arith.constant 0 : index
    %c0_37 = arith.constant 0 : index
    %c0_38 = arith.constant 0 : index
    %57 = vector.load %arg12[%c0_36, %c0_37, %c0_38] : memref<2x1x16xf32, #tpu.memory_space<vmem>>, vector<1x1x16xf32>
    %58 = vector.shape_cast %57 : vector<1x1x16xf32> to vector<1x16xf32>
    %59 = vector.broadcast %58 : vector<1x16xf32> to vector<17x16xf32>
    %60 = arith.addf %56, %59 : vector<17x16xf32>
    %61 = arith.truncf %42 : vector<17x16xf32> to vector<17x16xbf16>
    %62 = arith.truncf %51 : vector<17x16xf32> to vector<17x16xbf16>
    %cst_39 = arith.constant dense<0.000000e+00> : vector<17x17xf32>
    %63 = tpu.matmul %61, %62, %cst_39 {dimension_numbers = #tpu.dot_dimension_numbers<[1], [1], [0], [0], [0, 0, 1, 0], [], []>} : vector<17x16xbf16>, vector<17x16xbf16>, vector<17x17xf32> -> vector<17x17xf32>
    %cst_40 = arith.constant 2.500000e-01 : f32
    %64 = vector.broadcast %cst_40 : f32 to vector<17x17xf32>
    %65 = arith.mulf %63, %64 : vector<17x17xf32>
    %cst_41 = arith.constant dense<0xFF800000> : vector<17xf32>
    %66 = vector.multi_reduction <maximumf>, %65, %cst_41 [1] : vector<17x17xf32> to vector<17xf32>
    %67 = vector.shape_cast %66 : vector<17xf32> to vector<17x1xf32>
    %68 = vector.broadcast %67 : vector<17x1xf32> to vector<17x17xf32>
    %69 = arith.subf %65, %68 : vector<17x17xf32>
    %70 = math.exp %69 : vector<17x17xf32>
    %cst_42 = arith.constant dense<0.000000e+00> : vector<17xf32>
    %71 = vector.multi_reduction <add>, %70, %cst_42 [1] : vector<17x17xf32> to vector<17xf32>
    %72 = vector.shape_cast %71 : vector<17xf32> to vector<17x1xf32>
    %73 = tpu.reciprocal %72 {approx = true} : vector<17x1xf32> -> vector<17x1xf32>
    %74 = vector.broadcast %73 : vector<17x1xf32> to vector<17x17xf32>
    %75 = arith.mulf %70, %74 : vector<17x17xf32>
    %76 = arith.truncf %75 : vector<17x17xf32> to vector<17x17xbf16>
    %77 = arith.truncf %60 : vector<17x16xf32> to vector<17x16xbf16>
    %cst_43 = arith.constant dense<0.000000e+00> : vector<17x16xf32>
    %78 = tpu.matmul %76, %77, %cst_43 {dimension_numbers = #tpu.dot_dimension_numbers<[1], [0], [0], [1], [0, 0, 1, 1], [], []>} : vector<17x17xbf16>, vector<17x16xbf16>, vector<17x16xf32> -> vector<17x16xf32>
    %c0_44 = arith.constant 0 : index
    %c0_45 = arith.constant 0 : index
    %c0_46 = arith.constant 0 : index
    %79 = vector.load %arg13[%c0_44, %c0_45, %c0_46] : memref<2x16x32xf32, #tpu.memory_space<vmem>>, vector<1x16x32xf32>
    %80 = vector.shape_cast %79 : vector<1x16x32xf32> to vector<16x32xf32>
    %81 = arith.truncf %78 : vector<17x16xf32> to vector<17x16xbf16>
    %82 = arith.truncf %80 : vector<16x32xf32> to vector<16x32xbf16>
    %cst_47 = arith.constant dense<0.000000e+00> : vector<17x32xf32>
    %83 = tpu.matmul %81, %82, %cst_47 {dimension_numbers = #tpu.dot_dimension_numbers<[1], [0], [0], [1], [0, 0, 1, 1], [], []>} : vector<17x16xbf16>, vector<16x32xbf16>, vector<17x32xf32> -> vector<17x32xf32>
    %84 = arith.addf %33, %83 : vector<17x32xf32>
    %c1 = arith.constant 1 : index
    %c0_48 = arith.constant 0 : index
    %c0_49 = arith.constant 0 : index
    %85 = vector.load %arg7[%c1, %c0_48, %c0_49] : memref<2x32x16xf32, #tpu.memory_space<vmem>>, vector<1x32x16xf32>
    %86 = vector.shape_cast %85 : vector<1x32x16xf32> to vector<32x16xf32>
    %87 = arith.truncf %31 : vector<17x32xf32> to vector<17x32xbf16>
    %88 = arith.truncf %86 : vector<32x16xf32> to vector<32x16xbf16>
    %cst_50 = arith.constant dense<0.000000e+00> : vector<17x16xf32>
    %89 = tpu.matmul %87, %88, %cst_50 {dimension_numbers = #tpu.dot_dimension_numbers<[1], [0], [0], [1], [0, 0, 1, 1], [], []>} : vector<17x32xbf16>, vector<32x16xbf16>, vector<17x16xf32> -> vector<17x16xf32>
    %c1_51 = arith.constant 1 : index
    %c0_52 = arith.constant 0 : index
    %c0_53 = arith.constant 0 : index
    %90 = vector.load %arg8[%c1_51, %c0_52, %c0_53] : memref<2x1x16xf32, #tpu.memory_space<vmem>>, vector<1x1x16xf32>
    %91 = vector.shape_cast %90 : vector<1x1x16xf32> to vector<1x16xf32>
    %92 = vector.broadcast %91 : vector<1x16xf32> to vector<17x16xf32>
    %93 = arith.addf %89, %92 : vector<17x16xf32>
    %c1_54 = arith.constant 1 : index
    %c0_55 = arith.constant 0 : index
    %c0_56 = arith.constant 0 : index
    %94 = vector.load %arg9[%c1_54, %c0_55, %c0_56] : memref<2x32x16xf32, #tpu.memory_space<vmem>>, vector<1x32x16xf32>
    %95 = vector.shape_cast %94 : vector<1x32x16xf32> to vector<32x16xf32>
    %96 = arith.truncf %31 : vector<17x32xf32> to vector<17x32xbf16>
    %97 = arith.truncf %95 : vector<32x16xf32> to vector<32x16xbf16>
    %cst_57 = arith.constant dense<0.000000e+00> : vector<17x16xf32>
    %98 = tpu.matmul %96, %97, %cst_57 {dimension_numbers = #tpu.dot_dimension_numbers<[1], [0], [0], [1], [0, 0, 1, 1], [], []>} : vector<17x32xbf16>, vector<32x16xbf16>, vector<17x16xf32> -> vector<17x16xf32>
    %c1_58 = arith.constant 1 : index
    %c0_59 = arith.constant 0 : index
    %c0_60 = arith.constant 0 : index
    %99 = vector.load %arg10[%c1_58, %c0_59, %c0_60] : memref<2x1x16xf32, #tpu.memory_space<vmem>>, vector<1x1x16xf32>
    %100 = vector.shape_cast %99 : vector<1x1x16xf32> to vector<1x16xf32>
    %101 = vector.broadcast %100 : vector<1x16xf32> to vector<17x16xf32>
    %102 = arith.addf %98, %101 : vector<17x16xf32>
    %c1_61 = arith.constant 1 : index
    %c0_62 = arith.constant 0 : index
    %c0_63 = arith.constant 0 : index
    %103 = vector.load %arg11[%c1_61, %c0_62, %c0_63] : memref<2x32x16xf32, #tpu.memory_space<vmem>>, vector<1x32x16xf32>
    %104 = vector.shape_cast %103 : vector<1x32x16xf32> to vector<32x16xf32>
    %105 = arith.truncf %31 : vector<17x32xf32> to vector<17x32xbf16>
    %106 = arith.truncf %104 : vector<32x16xf32> to vector<32x16xbf16>
    %cst_64 = arith.constant dense<0.000000e+00> : vector<17x16xf32>
    %107 = tpu.matmul %105, %106, %cst_64 {dimension_numbers = #tpu.dot_dimension_numbers<[1], [0], [0], [1], [0, 0, 1, 1], [], []>} : vector<17x32xbf16>, vector<32x16xbf16>, vector<17x16xf32> -> vector<17x16xf32>
    %c1_65 = arith.constant 1 : index
    %c0_66 = arith.constant 0 : index
    %c0_67 = arith.constant 0 : index
    %108 = vector.load %arg12[%c1_65, %c0_66, %c0_67] : memref<2x1x16xf32, #tpu.memory_space<vmem>>, vector<1x1x16xf32>
    %109 = vector.shape_cast %108 : vector<1x1x16xf32> to vector<1x16xf32>
    %110 = vector.broadcast %109 : vector<1x16xf32> to vector<17x16xf32>
    %111 = arith.addf %107, %110 : vector<17x16xf32>
    %112 = arith.truncf %93 : vector<17x16xf32> to vector<17x16xbf16>
    %113 = arith.truncf %102 : vector<17x16xf32> to vector<17x16xbf16>
    %cst_68 = arith.constant dense<0.000000e+00> : vector<17x17xf32>
    %114 = tpu.matmul %112, %113, %cst_68 {dimension_numbers = #tpu.dot_dimension_numbers<[1], [1], [0], [0], [0, 0, 1, 0], [], []>} : vector<17x16xbf16>, vector<17x16xbf16>, vector<17x17xf32> -> vector<17x17xf32>
    %cst_69 = arith.constant 2.500000e-01 : f32
    %115 = vector.broadcast %cst_69 : f32 to vector<17x17xf32>
    %116 = arith.mulf %114, %115 : vector<17x17xf32>
    %cst_70 = arith.constant dense<0xFF800000> : vector<17xf32>
    %117 = vector.multi_reduction <maximumf>, %116, %cst_70 [1] : vector<17x17xf32> to vector<17xf32>
    %118 = vector.shape_cast %117 : vector<17xf32> to vector<17x1xf32>
    %119 = vector.broadcast %118 : vector<17x1xf32> to vector<17x17xf32>
    %120 = arith.subf %116, %119 : vector<17x17xf32>
    %121 = math.exp %120 : vector<17x17xf32>
    %cst_71 = arith.constant dense<0.000000e+00> : vector<17xf32>
    %122 = vector.multi_reduction <add>, %121, %cst_71 [1] : vector<17x17xf32> to vector<17xf32>
    %123 = vector.shape_cast %122 : vector<17xf32> to vector<17x1xf32>
    %124 = tpu.reciprocal %123 {approx = true} : vector<17x1xf32> -> vector<17x1xf32>
    %125 = vector.broadcast %124 : vector<17x1xf32> to vector<17x17xf32>
    %126 = arith.mulf %121, %125 : vector<17x17xf32>
    %127 = arith.truncf %126 : vector<17x17xf32> to vector<17x17xbf16>
    %128 = arith.truncf %111 : vector<17x16xf32> to vector<17x16xbf16>
    %cst_72 = arith.constant dense<0.000000e+00> : vector<17x16xf32>
    %129 = tpu.matmul %127, %128, %cst_72 {dimension_numbers = #tpu.dot_dimension_numbers<[1], [0], [0], [1], [0, 0, 1, 1], [], []>} : vector<17x17xbf16>, vector<17x16xbf16>, vector<17x16xf32> -> vector<17x16xf32>
    %c1_73 = arith.constant 1 : index
    %c0_74 = arith.constant 0 : index
    %c0_75 = arith.constant 0 : index
    %130 = vector.load %arg13[%c1_73, %c0_74, %c0_75] : memref<2x16x32xf32, #tpu.memory_space<vmem>>, vector<1x16x32xf32>
    %131 = vector.shape_cast %130 : vector<1x16x32xf32> to vector<16x32xf32>
    %132 = arith.truncf %129 : vector<17x16xf32> to vector<17x16xbf16>
    %133 = arith.truncf %131 : vector<16x32xf32> to vector<16x32xbf16>
    %cst_76 = arith.constant dense<0.000000e+00> : vector<17x32xf32>
    %134 = tpu.matmul %132, %133, %cst_76 {dimension_numbers = #tpu.dot_dimension_numbers<[1], [0], [0], [1], [0, 0, 1, 1], [], []>} : vector<17x16xbf16>, vector<16x32xbf16>, vector<17x32xf32> -> vector<17x32xf32>
    %135 = arith.addf %84, %134 : vector<17x32xf32>
    %136 = vector.broadcast %32 : vector<1x32xf32> to vector<17x32xf32>
    %137 = arith.addf %135, %136 : vector<17x32xf32>
    %138 = arith.addf %7, %137 : vector<17x32xf32>
    %c0_77 = arith.constant 0 : index
    %c0_78 = arith.constant 0 : index
    %139 = vector.load %arg15[%c0_77, %c0_78] : memref<1x32xf32, #tpu.memory_space<vmem>>, vector<1x32xf32>
    %c0_79 = arith.constant 0 : index
    %c0_80 = arith.constant 0 : index
    %140 = vector.load %arg16[%c0_79, %c0_80] : memref<1x32xf32, #tpu.memory_space<vmem>>, vector<1x32xf32>
    %cst_81 = arith.constant dense<0.000000e+00> : vector<17xf32>
    %141 = vector.multi_reduction <add>, %138, %cst_81 [1] : vector<17x32xf32> to vector<17xf32>
    %142 = vector.shape_cast %141 : vector<17xf32> to vector<17x1xf32>
    %cst_82 = arith.constant 3.200000e+01 : f32
    %143 = vector.broadcast %cst_82 : f32 to vector<17x1xf32>
    %144 = arith.divf %142, %143 : vector<17x1xf32>
    %145 = vector.broadcast %144 : vector<17x1xf32> to vector<17x32xf32>
    %146 = arith.subf %138, %145 : vector<17x32xf32>
    %147 = arith.mulf %146, %146 : vector<17x32xf32>
    %cst_83 = arith.constant dense<0.000000e+00> : vector<17xf32>
    %148 = vector.multi_reduction <add>, %147, %cst_83 [1] : vector<17x32xf32> to vector<17xf32>
    %149 = vector.shape_cast %148 : vector<17xf32> to vector<17x1xf32>
    %cst_84 = arith.constant 3.200000e+01 : f32
    %150 = vector.broadcast %cst_84 : f32 to vector<17x1xf32>
    %151 = arith.divf %149, %150 : vector<17x1xf32>
    %152 = vector.broadcast %144 : vector<17x1xf32> to vector<17x32xf32>
    %153 = arith.subf %138, %152 : vector<17x32xf32>
    %cst_85 = arith.constant 9.99999997E-7 : f32
    %154 = vector.broadcast %cst_85 : f32 to vector<17x1xf32>
    %155 = arith.addf %151, %154 : vector<17x1xf32>
    %156 = math.rsqrt %155 : vector<17x1xf32>
    %157 = vector.broadcast %156 : vector<17x1xf32> to vector<17x32xf32>
    %158 = arith.mulf %153, %157 : vector<17x32xf32>
    %159 = vector.broadcast %139 : vector<1x32xf32> to vector<17x32xf32>
    %160 = arith.mulf %158, %159 : vector<17x32xf32>
    %161 = vector.broadcast %140 : vector<1x32xf32> to vector<17x32xf32>
    %162 = arith.addf %160, %161 : vector<17x32xf32>
    %c0_86 = arith.constant 0 : index
    %c0_87 = arith.constant 0 : index
    %163 = vector.load %arg17[%c0_86, %c0_87] : memref<32x64xf32, #tpu.memory_space<vmem>>, vector<32x64xf32>
    %164 = arith.truncf %162 : vector<17x32xf32> to vector<17x32xbf16>
    %165 = arith.truncf %163 : vector<32x64xf32> to vector<32x64xbf16>
    %cst_88 = arith.constant dense<0.000000e+00> : vector<17x64xf32>
    %166 = tpu.matmul %164, %165, %cst_88 {dimension_numbers = #tpu.dot_dimension_numbers<[1], [0], [0], [1], [0, 0, 1, 1], [], []>} : vector<17x32xbf16>, vector<32x64xbf16>, vector<17x64xf32> -> vector<17x64xf32>
    %c0_89 = arith.constant 0 : index
    %c0_90 = arith.constant 0 : index
    %167 = vector.load %arg18[%c0_89, %c0_90] : memref<1x64xf32, #tpu.memory_space<vmem>>, vector<1x64xf32>
    %168 = vector.broadcast %167 : vector<1x64xf32> to vector<17x64xf32>
    %169 = arith.addf %166, %168 : vector<17x64xf32>
    %170 = arith.mulf %169, %169 : vector<17x64xf32>
    %171 = arith.mulf %169, %170 : vector<17x64xf32>
    %cst_91 = arith.constant 4.471500e-02 : f32
    %172 = vector.broadcast %cst_91 : f32 to vector<17x64xf32>
    %173 = arith.mulf %172, %171 : vector<17x64xf32>
    %174 = arith.addf %169, %173 : vector<17x64xf32>
    %cst_92 = arith.constant 0.797884583 : f32
    %175 = vector.broadcast %cst_92 : f32 to vector<17x64xf32>
    %176 = arith.mulf %175, %174 : vector<17x64xf32>
    %177 = math.tanh %176 : vector<17x64xf32>
    %cst_93 = arith.constant 1.000000e+00 : f32
    %178 = vector.broadcast %cst_93 : f32 to vector<17x64xf32>
    %179 = arith.addf %178, %177 : vector<17x64xf32>
    %cst_94 = arith.constant 5.000000e-01 : f32
    %180 = vector.broadcast %cst_94 : f32 to vector<17x64xf32>
    %181 = arith.mulf %180, %179 : vector<17x64xf32>
    %182 = arith.mulf %169, %181 : vector<17x64xf32>
    %c0_95 = arith.constant 0 : index
    %c0_96 = arith.constant 0 : index
    %183 = vector.load %arg19[%c0_95, %c0_96] : memref<64x32xf32, #tpu.memory_space<vmem>>, vector<64x32xf32>
    %184 = arith.truncf %182 : vector<17x64xf32> to vector<17x64xbf16>
    %185 = arith.truncf %183 : vector<64x32xf32> to vector<64x32xbf16>
    %cst_97 = arith.constant dense<0.000000e+00> : vector<17x32xf32>
    %186 = tpu.matmul %184, %185, %cst_97 {dimension_numbers = #tpu.dot_dimension_numbers<[1], [0], [0], [1], [0, 0, 1, 1], [], []>} : vector<17x64xbf16>, vector<64x32xbf16>, vector<17x32xf32> -> vector<17x32xf32>
    %187 = arith.addf %138, %186 : vector<17x32xf32>
    %c0_98 = arith.constant 0 : index
    %c0_99 = arith.constant 0 : index
    %188 = vector.load %arg20[%c0_98, %c0_99] : memref<1x32xf32, #tpu.memory_space<vmem>>, vector<1x32xf32>
    %189 = vector.broadcast %188 : vector<1x32xf32> to vector<17x32xf32>
    %190 = arith.addf %187, %189 : vector<17x32xf32>
    %c0_100 = arith.constant 0 : index
    %c0_101 = arith.constant 0 : index
    %191 = vector.load %arg21[%c0_100, %c0_101] : memref<1x32xf32, #tpu.memory_space<vmem>>, vector<1x32xf32>
    %c0_102 = arith.constant 0 : index
    %c0_103 = arith.constant 0 : index
    %192 = vector.load %arg22[%c0_102, %c0_103] : memref<1x32xf32, #tpu.memory_space<vmem>>, vector<1x32xf32>
    %cst_104 = arith.constant dense<0.000000e+00> : vector<17xf32>
    %193 = vector.multi_reduction <add>, %190, %cst_104 [1] : vector<17x32xf32> to vector<17xf32>
    %194 = vector.shape_cast %193 : vector<17xf32> to vector<17x1xf32>
    %cst_105 = arith.constant 3.200000e+01 : f32
    %195 = vector.broadcast %cst_105 : f32 to vector<17x1xf32>
    %196 = arith.divf %194, %195 : vector<17x1xf32>
    %197 = vector.broadcast %196 : vector<17x1xf32> to vector<17x32xf32>
    %198 = arith.subf %190, %197 : vector<17x32xf32>
    %199 = arith.mulf %198, %198 : vector<17x32xf32>
    %cst_106 = arith.constant dense<0.000000e+00> : vector<17xf32>
    %200 = vector.multi_reduction <add>, %199, %cst_106 [1] : vector<17x32xf32> to vector<17xf32>
    %201 = vector.shape_cast %200 : vector<17xf32> to vector<17x1xf32>
    %cst_107 = arith.constant 3.200000e+01 : f32
    %202 = vector.broadcast %cst_107 : f32 to vector<17x1xf32>
    %203 = arith.divf %201, %202 : vector<17x1xf32>
    %204 = vector.broadcast %196 : vector<17x1xf32> to vector<17x32xf32>
    %205 = arith.subf %190, %204 : vector<17x32xf32>
    %cst_108 = arith.constant 9.99999997E-7 : f32
    %206 = vector.broadcast %cst_108 : f32 to vector<17x1xf32>
    %207 = arith.addf %203, %206 : vector<17x1xf32>
    %208 = math.rsqrt %207 : vector<17x1xf32>
    %209 = vector.broadcast %208 : vector<17x1xf32> to vector<17x32xf32>
    %210 = arith.mulf %205, %209 : vector<17x32xf32>
    %211 = vector.broadcast %191 : vector<1x32xf32> to vector<17x32xf32>
    %212 = arith.mulf %210, %211 : vector<17x32xf32>
    %213 = vector.broadcast %192 : vector<1x32xf32> to vector<17x32xf32>
    %214 = arith.addf %212, %213 : vector<17x32xf32>
    %215 = vector.extract_strided_slice %214 {offsets = [0, 0], sizes = [1, 32], strides = [1, 1]} : vector<17x32xf32> to vector<1x32xf32>
    %c0_109 = arith.constant 0 : index
    %c0_110 = arith.constant 0 : index
    %c0_111 = arith.constant 0 : index
    %216 = vector.load %arg2[%c0_109, %c0_110, %c0_111] : memref<1x8x32xf32, #tpu.memory_space<vmem>>, vector<1x8x32xf32>
    %217 = vector.shape_cast %216 : vector<1x8x32xf32> to vector<8x32xf32>
    %c0_112 = arith.constant 0 : index
    %c0_113 = arith.constant 0 : index
    %218 = vector.load %arg30[%c0_112, %c0_113] : memref<1x32xf32, #tpu.memory_space<vmem>>, vector<1x32xf32>
    %cst_114 = arith.constant 0.000000e+00 : f32
    %219 = vector.broadcast %cst_114 : f32 to vector<1x32xf32>
    %c0_115 = arith.constant 0 : index
    %c0_116 = arith.constant 0 : index
    %c0_117 = arith.constant 0 : index
    %220 = vector.load %arg23[%c0_115, %c0_116, %c0_117] : memref<2x32x16xf32, #tpu.memory_space<vmem>>, vector<1x32x16xf32>
    %221 = vector.shape_cast %220 : vector<1x32x16xf32> to vector<32x16xf32>
    %222 = arith.truncf %215 : vector<1x32xf32> to vector<1x32xbf16>
    %223 = arith.truncf %221 : vector<32x16xf32> to vector<32x16xbf16>
    %cst_118 = arith.constant dense<0.000000e+00> : vector<1x16xf32>
    %224 = tpu.matmul %222, %223, %cst_118 {dimension_numbers = #tpu.dot_dimension_numbers<[1], [0], [0], [1], [0, 0, 1, 1], [], []>} : vector<1x32xbf16>, vector<32x16xbf16>, vector<1x16xf32> -> vector<1x16xf32>
    %c0_119 = arith.constant 0 : index
    %c0_120 = arith.constant 0 : index
    %c0_121 = arith.constant 0 : index
    %225 = vector.load %arg24[%c0_119, %c0_120, %c0_121] : memref<2x1x16xf32, #tpu.memory_space<vmem>>, vector<1x1x16xf32>
    %226 = vector.shape_cast %225 : vector<1x1x16xf32> to vector<1x16xf32>
    %227 = arith.addf %224, %226 : vector<1x16xf32>
    %c0_122 = arith.constant 0 : index
    %c0_123 = arith.constant 0 : index
    %c0_124 = arith.constant 0 : index
    %228 = vector.load %arg25[%c0_122, %c0_123, %c0_124] : memref<2x32x16xf32, #tpu.memory_space<vmem>>, vector<1x32x16xf32>
    %229 = vector.shape_cast %228 : vector<1x32x16xf32> to vector<32x16xf32>
    %230 = arith.truncf %217 : vector<8x32xf32> to vector<8x32xbf16>
    %231 = arith.truncf %229 : vector<32x16xf32> to vector<32x16xbf16>
    %cst_125 = arith.constant dense<0.000000e+00> : vector<8x16xf32>
    %232 = tpu.matmul %230, %231, %cst_125 {dimension_numbers = #tpu.dot_dimension_numbers<[1], [0], [0], [1], [0, 0, 1, 1], [], []>} : vector<8x32xbf16>, vector<32x16xbf16>, vector<8x16xf32> -> vector<8x16xf32>
    %c0_126 = arith.constant 0 : index
    %c0_127 = arith.constant 0 : index
    %c0_128 = arith.constant 0 : index
    %233 = vector.load %arg26[%c0_126, %c0_127, %c0_128] : memref<2x1x16xf32, #tpu.memory_space<vmem>>, vector<1x1x16xf32>
    %234 = vector.shape_cast %233 : vector<1x1x16xf32> to vector<1x16xf32>
    %235 = vector.broadcast %234 : vector<1x16xf32> to vector<8x16xf32>
    %236 = arith.addf %232, %235 : vector<8x16xf32>
    %c0_129 = arith.constant 0 : index
    %c0_130 = arith.constant 0 : index
    %c0_131 = arith.constant 0 : index
    %237 = vector.load %arg27[%c0_129, %c0_130, %c0_131] : memref<2x32x16xf32, #tpu.memory_space<vmem>>, vector<1x32x16xf32>
    %238 = vector.shape_cast %237 : vector<1x32x16xf32> to vector<32x16xf32>
    %239 = arith.truncf %217 : vector<8x32xf32> to vector<8x32xbf16>
    %240 = arith.truncf %238 : vector<32x16xf32> to vector<32x16xbf16>
    %cst_132 = arith.constant dense<0.000000e+00> : vector<8x16xf32>
    %241 = tpu.matmul %239, %240, %cst_132 {dimension_numbers = #tpu.dot_dimension_numbers<[1], [0], [0], [1], [0, 0, 1, 1], [], []>} : vector<8x32xbf16>, vector<32x16xbf16>, vector<8x16xf32> -> vector<8x16xf32>
    %c0_133 = arith.constant 0 : index
    %c0_134 = arith.constant 0 : index
    %c0_135 = arith.constant 0 : index
    %242 = vector.load %arg28[%c0_133, %c0_134, %c0_135] : memref<2x1x16xf32, #tpu.memory_space<vmem>>, vector<1x1x16xf32>
    %243 = vector.shape_cast %242 : vector<1x1x16xf32> to vector<1x16xf32>
    %244 = vector.broadcast %243 : vector<1x16xf32> to vector<8x16xf32>
    %245 = arith.addf %241, %244 : vector<8x16xf32>
    %246 = arith.truncf %227 : vector<1x16xf32> to vector<1x16xbf16>
    %247 = arith.truncf %236 : vector<8x16xf32> to vector<8x16xbf16>
    %cst_136 = arith.constant dense<0.000000e+00> : vector<1x8xf32>
    %248 = tpu.matmul %246, %247, %cst_136 {dimension_numbers = #tpu.dot_dimension_numbers<[1], [1], [0], [0], [0, 0, 1, 0], [], []>} : vector<1x16xbf16>, vector<8x16xbf16>, vector<1x8xf32> -> vector<1x8xf32>
    %cst_137 = arith.constant 2.500000e-01 : f32
    %249 = vector.broadcast %cst_137 : f32 to vector<1x8xf32>
    %250 = arith.mulf %248, %249 : vector<1x8xf32>
    %cst_138 = arith.constant dense<0xFF800000> : vector<1xf32>
    %251 = vector.multi_reduction <maximumf>, %250, %cst_138 [1] : vector<1x8xf32> to vector<1xf32>
    %252 = vector.shape_cast %251 : vector<1xf32> to vector<1x1xf32>
    %253 = vector.broadcast %252 : vector<1x1xf32> to vector<1x8xf32>
    %254 = arith.subf %250, %253 : vector<1x8xf32>
    %255 = math.exp %254 : vector<1x8xf32>
    %cst_139 = arith.constant dense<0.000000e+00> : vector<1xf32>
    %256 = vector.multi_reduction <add>, %255, %cst_139 [1] : vector<1x8xf32> to vector<1xf32>
    %257 = vector.shape_cast %256 : vector<1xf32> to vector<1x1xf32>
    %258 = tpu.reciprocal %257 {approx = true} : vector<1x1xf32> -> vector<1x1xf32>
    %259 = vector.broadcast %258 : vector<1x1xf32> to vector<1x8xf32>
    %260 = arith.mulf %255, %259 : vector<1x8xf32>
    %261 = arith.truncf %260 : vector<1x8xf32> to vector<1x8xbf16>
    %262 = arith.truncf %245 : vector<8x16xf32> to vector<8x16xbf16>
    %cst_140 = arith.constant dense<0.000000e+00> : vector<1x16xf32>
    %263 = tpu.matmul %261, %262, %cst_140 {dimension_numbers = #tpu.dot_dimension_numbers<[1], [0], [0], [1], [0, 0, 1, 1], [], []>} : vector<1x8xbf16>, vector<8x16xbf16>, vector<1x16xf32> -> vector<1x16xf32>
    %c0_141 = arith.constant 0 : index
    %c0_142 = arith.constant 0 : index
    %c0_143 = arith.constant 0 : index
    %264 = vector.load %arg29[%c0_141, %c0_142, %c0_143] : memref<2x16x32xf32, #tpu.memory_space<vmem>>, vector<1x16x32xf32>
    %265 = vector.shape_cast %264 : vector<1x16x32xf32> to vector<16x32xf32>
    %266 = arith.truncf %263 : vector<1x16xf32> to vector<1x16xbf16>
    %267 = arith.truncf %265 : vector<16x32xf32> to vector<16x32xbf16>
    %cst_144 = arith.constant dense<0.000000e+00> : vector<1x32xf32>
    %268 = tpu.matmul %266, %267, %cst_144 {dimension_numbers = #tpu.dot_dimension_numbers<[1], [0], [0], [1], [0, 0, 1, 1], [], []>} : vector<1x16xbf16>, vector<16x32xbf16>, vector<1x32xf32> -> vector<1x32xf32>
    %269 = arith.addf %219, %268 : vector<1x32xf32>
    %c1_145 = arith.constant 1 : index
    %c0_146 = arith.constant 0 : index
    %c0_147 = arith.constant 0 : index
    %270 = vector.load %arg23[%c1_145, %c0_146, %c0_147] : memref<2x32x16xf32, #tpu.memory_space<vmem>>, vector<1x32x16xf32>
    %271 = vector.shape_cast %270 : vector<1x32x16xf32> to vector<32x16xf32>
    %272 = arith.truncf %215 : vector<1x32xf32> to vector<1x32xbf16>
    %273 = arith.truncf %271 : vector<32x16xf32> to vector<32x16xbf16>
    %cst_148 = arith.constant dense<0.000000e+00> : vector<1x16xf32>
    %274 = tpu.matmul %272, %273, %cst_148 {dimension_numbers = #tpu.dot_dimension_numbers<[1], [0], [0], [1], [0, 0, 1, 1], [], []>} : vector<1x32xbf16>, vector<32x16xbf16>, vector<1x16xf32> -> vector<1x16xf32>
    %c1_149 = arith.constant 1 : index
    %c0_150 = arith.constant 0 : index
    %c0_151 = arith.constant 0 : index
    %275 = vector.load %arg24[%c1_149, %c0_150, %c0_151] : memref<2x1x16xf32, #tpu.memory_space<vmem>>, vector<1x1x16xf32>
    %276 = vector.shape_cast %275 : vector<1x1x16xf32> to vector<1x16xf32>
    %277 = arith.addf %274, %276 : vector<1x16xf32>
    %c1_152 = arith.constant 1 : index
    %c0_153 = arith.constant 0 : index
    %c0_154 = arith.constant 0 : index
    %278 = vector.load %arg25[%c1_152, %c0_153, %c0_154] : memref<2x32x16xf32, #tpu.memory_space<vmem>>, vector<1x32x16xf32>
    %279 = vector.shape_cast %278 : vector<1x32x16xf32> to vector<32x16xf32>
    %280 = arith.truncf %217 : vector<8x32xf32> to vector<8x32xbf16>
    %281 = arith.truncf %279 : vector<32x16xf32> to vector<32x16xbf16>
    %cst_155 = arith.constant dense<0.000000e+00> : vector<8x16xf32>
    %282 = tpu.matmul %280, %281, %cst_155 {dimension_numbers = #tpu.dot_dimension_numbers<[1], [0], [0], [1], [0, 0, 1, 1], [], []>} : vector<8x32xbf16>, vector<32x16xbf16>, vector<8x16xf32> -> vector<8x16xf32>
    %c1_156 = arith.constant 1 : index
    %c0_157 = arith.constant 0 : index
    %c0_158 = arith.constant 0 : index
    %283 = vector.load %arg26[%c1_156, %c0_157, %c0_158] : memref<2x1x16xf32, #tpu.memory_space<vmem>>, vector<1x1x16xf32>
    %284 = vector.shape_cast %283 : vector<1x1x16xf32> to vector<1x16xf32>
    %285 = vector.broadcast %284 : vector<1x16xf32> to vector<8x16xf32>
    %286 = arith.addf %282, %285 : vector<8x16xf32>
    %c1_159 = arith.constant 1 : index
    %c0_160 = arith.constant 0 : index
    %c0_161 = arith.constant 0 : index
    %287 = vector.load %arg27[%c1_159, %c0_160, %c0_161] : memref<2x32x16xf32, #tpu.memory_space<vmem>>, vector<1x32x16xf32>
    %288 = vector.shape_cast %287 : vector<1x32x16xf32> to vector<32x16xf32>
    %289 = arith.truncf %217 : vector<8x32xf32> to vector<8x32xbf16>
    %290 = arith.truncf %288 : vector<32x16xf32> to vector<32x16xbf16>
    %cst_162 = arith.constant dense<0.000000e+00> : vector<8x16xf32>
    %291 = tpu.matmul %289, %290, %cst_162 {dimension_numbers = #tpu.dot_dimension_numbers<[1], [0], [0], [1], [0, 0, 1, 1], [], []>} : vector<8x32xbf16>, vector<32x16xbf16>, vector<8x16xf32> -> vector<8x16xf32>
    %c1_163 = arith.constant 1 : index
    %c0_164 = arith.constant 0 : index
    %c0_165 = arith.constant 0 : index
    %292 = vector.load %arg28[%c1_163, %c0_164, %c0_165] : memref<2x1x16xf32, #tpu.memory_space<vmem>>, vector<1x1x16xf32>
    %293 = vector.shape_cast %292 : vector<1x1x16xf32> to vector<1x16xf32>
    %294 = vector.broadcast %293 : vector<1x16xf32> to vector<8x16xf32>
    %295 = arith.addf %291, %294 : vector<8x16xf32>
    %296 = arith.truncf %277 : vector<1x16xf32> to vector<1x16xbf16>
    %297 = arith.truncf %286 : vector<8x16xf32> to vector<8x16xbf16>
    %cst_166 = arith.constant dense<0.000000e+00> : vector<1x8xf32>
    %298 = tpu.matmul %296, %297, %cst_166 {dimension_numbers = #tpu.dot_dimension_numbers<[1], [1], [0], [0], [0, 0, 1, 0], [], []>} : vector<1x16xbf16>, vector<8x16xbf16>, vector<1x8xf32> -> vector<1x8xf32>
    %cst_167 = arith.constant 2.500000e-01 : f32
    %299 = vector.broadcast %cst_167 : f32 to vector<1x8xf32>
    %300 = arith.mulf %298, %299 : vector<1x8xf32>
    %cst_168 = arith.constant dense<0xFF800000> : vector<1xf32>
    %301 = vector.multi_reduction <maximumf>, %300, %cst_168 [1] : vector<1x8xf32> to vector<1xf32>
    %302 = vector.shape_cast %301 : vector<1xf32> to vector<1x1xf32>
    %303 = vector.broadcast %302 : vector<1x1xf32> to vector<1x8xf32>
    %304 = arith.subf %300, %303 : vector<1x8xf32>
    %305 = math.exp %304 : vector<1x8xf32>
    %cst_169 = arith.constant dense<0.000000e+00> : vector<1xf32>
    %306 = vector.multi_reduction <add>, %305, %cst_169 [1] : vector<1x8xf32> to vector<1xf32>
    %307 = vector.shape_cast %306 : vector<1xf32> to vector<1x1xf32>
    %308 = tpu.reciprocal %307 {approx = true} : vector<1x1xf32> -> vector<1x1xf32>
    %309 = vector.broadcast %308 : vector<1x1xf32> to vector<1x8xf32>
    %310 = arith.mulf %305, %309 : vector<1x8xf32>
    %311 = arith.truncf %310 : vector<1x8xf32> to vector<1x8xbf16>
    %312 = arith.truncf %295 : vector<8x16xf32> to vector<8x16xbf16>
    %cst_170 = arith.constant dense<0.000000e+00> : vector<1x16xf32>
    %313 = tpu.matmul %311, %312, %cst_170 {dimension_numbers = #tpu.dot_dimension_numbers<[1], [0], [0], [1], [0, 0, 1, 1], [], []>} : vector<1x8xbf16>, vector<8x16xbf16>, vector<1x16xf32> -> vector<1x16xf32>
    %c1_171 = arith.constant 1 : index
    %c0_172 = arith.constant 0 : index
    %c0_173 = arith.constant 0 : index
    %314 = vector.load %arg29[%c1_171, %c0_172, %c0_173] : memref<2x16x32xf32, #tpu.memory_space<vmem>>, vector<1x16x32xf32>
    %315 = vector.shape_cast %314 : vector<1x16x32xf32> to vector<16x32xf32>
    %316 = arith.truncf %313 : vector<1x16xf32> to vector<1x16xbf16>
    %317 = arith.truncf %315 : vector<16x32xf32> to vector<16x32xbf16>
    %cst_174 = arith.constant dense<0.000000e+00> : vector<1x32xf32>
    %318 = tpu.matmul %316, %317, %cst_174 {dimension_numbers = #tpu.dot_dimension_numbers<[1], [0], [0], [1], [0, 0, 1, 1], [], []>} : vector<1x16xbf16>, vector<16x32xbf16>, vector<1x32xf32> -> vector<1x32xf32>
    %319 = arith.addf %269, %318 : vector<1x32xf32>
    %320 = arith.addf %319, %218 : vector<1x32xf32>
    %321 = arith.addf %215, %320 : vector<1x32xf32>
    %c0_175 = arith.constant 0 : index
    %c0_176 = arith.constant 0 : index
    %322 = vector.load %arg31[%c0_175, %c0_176] : memref<1x32xf32, #tpu.memory_space<vmem>>, vector<1x32xf32>
    %c0_177 = arith.constant 0 : index
    %c0_178 = arith.constant 0 : index
    %323 = vector.load %arg32[%c0_177, %c0_178] : memref<1x32xf32, #tpu.memory_space<vmem>>, vector<1x32xf32>
    %cst_179 = arith.constant dense<0.000000e+00> : vector<1xf32>
    %324 = vector.multi_reduction <add>, %321, %cst_179 [1] : vector<1x32xf32> to vector<1xf32>
    %325 = vector.shape_cast %324 : vector<1xf32> to vector<1x1xf32>
    %cst_180 = arith.constant 3.200000e+01 : f32
    %326 = vector.broadcast %cst_180 : f32 to vector<1x1xf32>
    %327 = arith.divf %325, %326 : vector<1x1xf32>
    %328 = vector.broadcast %327 : vector<1x1xf32> to vector<1x32xf32>
    %329 = arith.subf %321, %328 : vector<1x32xf32>
    %330 = arith.mulf %329, %329 : vector<1x32xf32>
    %cst_181 = arith.constant dense<0.000000e+00> : vector<1xf32>
    %331 = vector.multi_reduction <add>, %330, %cst_181 [1] : vector<1x32xf32> to vector<1xf32>
    %332 = vector.shape_cast %331 : vector<1xf32> to vector<1x1xf32>
    %cst_182 = arith.constant 3.200000e+01 : f32
    %333 = vector.broadcast %cst_182 : f32 to vector<1x1xf32>
    %334 = arith.divf %332, %333 : vector<1x1xf32>
    %335 = vector.broadcast %327 : vector<1x1xf32> to vector<1x32xf32>
    %336 = arith.subf %321, %335 : vector<1x32xf32>
    %cst_183 = arith.constant 9.99999996E-13 : f32
    %337 = vector.broadcast %cst_183 : f32 to vector<1x1xf32>
    %338 = arith.addf %334, %337 : vector<1x1xf32>
    %339 = math.rsqrt %338 : vector<1x1xf32>
    %340 = vector.broadcast %339 : vector<1x1xf32> to vector<1x32xf32>
    %341 = arith.mulf %336, %340 : vector<1x32xf32>
    %342 = arith.mulf %341, %322 : vector<1x32xf32>
    %343 = arith.addf %342, %323 : vector<1x32xf32>
    %c0_184 = arith.constant 0 : index
    %c0_185 = arith.constant 0 : index
    %344 = vector.load %arg33[%c0_184, %c0_185] : memref<32x32xf32, #tpu.memory_space<vmem>>, vector<32x32xf32>
    %345 = arith.truncf %215 : vector<1x32xf32> to vector<1x32xbf16>
    %346 = arith.truncf %344 : vector<32x32xf32> to vector<32x32xbf16>
    %cst_186 = arith.constant dense<0.000000e+00> : vector<1x32xf32>
    %347 = tpu.matmul %345, %346, %cst_186 {dimension_numbers = #tpu.dot_dimension_numbers<[1], [0], [0], [1], [0, 0, 1, 1], [], []>} : vector<1x32xbf16>, vector<32x32xbf16>, vector<1x32xf32> -> vector<1x32xf32>
    %c0_187 = arith.constant 0 : index
    %c0_188 = arith.constant 0 : index
    %348 = vector.load %arg34[%c0_187, %c0_188] : memref<1x32xf32, #tpu.memory_space<vmem>>, vector<1x32xf32>
    %349 = arith.addf %347, %348 : vector<1x32xf32>
    %c0_189 = arith.constant 0 : index
    %c0_190 = arith.constant 0 : index
    %350 = vector.load %arg35[%c0_189, %c0_190] : memref<32x32xf32, #tpu.memory_space<vmem>>, vector<32x32xf32>
    %351 = arith.truncf %343 : vector<1x32xf32> to vector<1x32xbf16>
    %352 = arith.truncf %350 : vector<32x32xf32> to vector<32x32xbf16>
    %cst_191 = arith.constant dense<0.000000e+00> : vector<1x32xf32>
    %353 = tpu.matmul %351, %352, %cst_191 {dimension_numbers = #tpu.dot_dimension_numbers<[1], [0], [0], [1], [0, 0, 1, 1], [], []>} : vector<1x32xbf16>, vector<32x32xbf16>, vector<1x32xf32> -> vector<1x32xf32>
    %c0_192 = arith.constant 0 : index
    %c0_193 = arith.constant 0 : index
    %354 = vector.load %arg36[%c0_192, %c0_193] : memref<1x32xf32, #tpu.memory_space<vmem>>, vector<1x32xf32>
    %355 = arith.addf %353, %354 : vector<1x32xf32>
    %c0_194 = arith.constant 0 : index
    %c0_195 = arith.constant 0 : index
    %356 = vector.load %arg37[%c0_194, %c0_195] : memref<32x5xf32, #tpu.memory_space<vmem>>, vector<32x5xf32>
    %357 = arith.truncf %349 : vector<1x32xf32> to vector<1x32xbf16>
    %358 = arith.truncf %356 : vector<32x5xf32> to vector<32x5xbf16>
    %cst_196 = arith.constant dense<0.000000e+00> : vector<1x5xf32>
    %359 = tpu.matmul %357, %358, %cst_196 {dimension_numbers = #tpu.dot_dimension_numbers<[1], [0], [0], [1], [0, 0, 1, 1], [], []>} : vector<1x32xbf16>, vector<32x5xbf16>, vector<1x5xf32> -> vector<1x5xf32>
    %c0_197 = arith.constant 0 : index
    %c0_198 = arith.constant 0 : index
    %360 = vector.load %arg38[%c0_197, %c0_198] : memref<32x5xf32, #tpu.memory_space<vmem>>, vector<32x5xf32>
    %361 = arith.truncf %355 : vector<1x32xf32> to vector<1x32xbf16>
    %362 = arith.truncf %360 : vector<32x5xf32> to vector<32x5xbf16>
    %cst_199 = arith.constant dense<0.000000e+00> : vector<1x5xf32>
    %363 = tpu.matmul %361, %362, %cst_199 {dimension_numbers = #tpu.dot_dimension_numbers<[1], [0], [0], [1], [0, 0, 1, 1], [], []>} : vector<1x32xbf16>, vector<32x5xbf16>, vector<1x5xf32> -> vector<1x5xf32>
    %364 = arith.addf %359, %363 : vector<1x5xf32>
    %c0_200 = arith.constant 0 : index
    %c0_201 = arith.constant 0 : index
    %365 = vector.load %arg39[%c0_200, %c0_201] : memref<1x5xf32, #tpu.memory_space<vmem>>, vector<1x5xf32>
    %366 = arith.addf %364, %365 : vector<1x5xf32>
    %c0_202 = arith.constant 0 : index
    %c0_203 = arith.constant 0 : index
    %c0_204 = arith.constant 0 : index
    %367 = vector.load %arg40[%c0_202, %c0_203, %c0_204] : memref<1x1x5xf32, #tpu.memory_space<vmem>>, vector<1x1x5xf32>
    %368 = vector.shape_cast %367 : vector<1x1x5xf32> to vector<1x5xf32>
    %369 = vector.shape_cast %366 : vector<1x5xf32> to vector<1x1x5xf32>
    tpu.vector_store %arg40[%c0_202, %c0_203, %c0_204], %369 {strides = array<i32>} : memref<1x1x5xf32, #tpu.memory_space<vmem>>, vector<1x1x5xf32>,
    return
  }
  func.func @transform_0(%arg0: i32) -> (i32, i32, i32) {
    %c0_i32 = arith.constant 0 : i32
    %c0_i32_0 = arith.constant 0 : i32
    %c0_i32_1 = arith.constant 0 : i32
    return %arg0, %c0_i32, %c0_i32_0 : i32, i32, i32
  }
  func.func @transform_1(%arg0: i32) -> (i32, i32, i32) {
    %c0_i32 = arith.constant 0 : i32
    %c0_i32_0 = arith.constant 0 : i32
    %c0_i32_1 = arith.constant 0 : i32
    return %arg0, %c0_i32, %c0_i32_0 : i32, i32, i32
  }
  func.func @transform_2(%arg0: i32) -> (i32, i32) {
    %c0_i32 = arith.constant 0 : i32
    %c0_i32_0 = arith.constant 0 : i32
    %c0_i32_1 = arith.constant 0 : i32
    return %c0_i32, %c0_i32_0 : i32, i32
  }
  func.func @transform_3(%arg0: i32) -> (i32, i32) {
    %c0_i32 = arith.constant 0 : i32
    %c0_i32_0 = arith.constant 0 : i32
    %c0_i32_1 = arith.constant 0 : i32
    return %c0_i32, %c0_i32_0 : i32, i32
  }
  func.func @transform_4(%arg0: i32) -> (i32, i32) {
    %c0_i32 = arith.constant 0 : i32
    %c0_i32_0 = arith.constant 0 : i32
    %c0_i32_1 = arith.constant 0 : i32
    return %c0_i32, %c0_i32_0 : i32, i32
  }
  func.func @transform_5(%arg0: i32) -> (i32, i32) {
    %c0_i32 = arith.constant 0 : i32
    %c0_i32_0 = arith.constant 0 : i32
    %c0_i32_1 = arith.constant 0 : i32
    return %c0_i32, %c0_i32_0 : i32, i32
  }
  func.func @transform_6(%arg0: i32) -> (i32, i32, i32) {
    %c0_i32 = arith.constant 0 : i32
    %c0_i32_0 = arith.constant 0 : i32
    %c0_i32_1 = arith.constant 0 : i32
    %c0_i32_2 = arith.constant 0 : i32
    return %c0_i32, %c0_i32_0, %c0_i32_1 : i32, i32, i32
  }
  func.func @transform_7(%arg0: i32) -> (i32, i32, i32) {
    %c0_i32 = arith.constant 0 : i32
    %c0_i32_0 = arith.constant 0 : i32
    %c0_i32_1 = arith.constant 0 : i32
    %c0_i32_2 = arith.constant 0 : i32
    return %c0_i32, %c0_i32_0, %c0_i32_1 : i32, i32, i32
  }
  func.func @transform_8(%arg0: i32) -> (i32, i32, i32) {
    %c0_i32 = arith.constant 0 : i32
    %c0_i32_0 = arith.constant 0 : i32
    %c0_i32_1 = arith.constant 0 : i32
    %c0_i32_2 = arith.constant 0 : i32
    return %c0_i32, %c0_i32_0, %c0_i32_1 : i32, i32, i32
  }
  func.func @transform_9(%arg0: i32) -> (i32, i32, i32) {
    %c0_i32 = arith.constant 0 : i32
    %c0_i32_0 = arith.constant 0 : i32
    %c0_i32_1 = arith.constant 0 : i32
    %c0_i32_2 = arith.constant 0 : i32
    return %c0_i32, %c0_i32_0, %c0_i32_1 : i32, i32, i32
  }
  func.func @transform_10(%arg0: i32) -> (i32, i32, i32) {
    %c0_i32 = arith.constant 0 : i32
    %c0_i32_0 = arith.constant 0 : i32
    %c0_i32_1 = arith.constant 0 : i32
    %c0_i32_2 = arith.constant 0 : i32
    return %c0_i32, %c0_i32_0, %c0_i32_1 : i32, i32, i32
  }
  func.func @transform_11(%arg0: i32) -> (i32, i32, i32) {
    %c0_i32 = arith.constant 0 : i32
    %c0_i32_0 = arith.constant 0 : i32
    %c0_i32_1 = arith.constant 0 : i32
    %c0_i32_2 = arith.constant 0 : i32
    return %c0_i32, %c0_i32_0, %c0_i32_1 : i32, i32, i32
  }
  func.func @transform_12(%arg0: i32) -> (i32, i32, i32) {
    %c0_i32 = arith.constant 0 : i32
    %c0_i32_0 = arith.constant 0 : i32
    %c0_i32_1 = arith.constant 0 : i32
    %c0_i32_2 = arith.constant 0 : i32
    return %c0_i32, %c0_i32_0, %c0_i32_1 : i32, i32, i32
  }
  func.func @transform_13(%arg0: i32) -> (i32, i32) {
    %c0_i32 = arith.constant 0 : i32
    %c0_i32_0 = arith.constant 0 : i32
    %c0_i32_1 = arith.constant 0 : i32
    return %c0_i32, %c0_i32_0 : i32, i32
  }
  func.func @transform_14(%arg0: i32) -> (i32, i32) {
    %c0_i32 = arith.constant 0 : i32
    %c0_i32_0 = arith.constant 0 : i32
    %c0_i32_1 = arith.constant 0 : i32
    return %c0_i32, %c0_i32_0 : i32, i32
  }
  func.func @transform_15(%arg0: i32) -> (i32, i32) {
    %c0_i32 = arith.constant 0 : i32
    %c0_i32_0 = arith.constant 0 : i32
    %c0_i32_1 = arith.constant 0 : i32
    return %c0_i32, %c0_i32_0 : i32, i32
  }
  func.func @transform_16(%arg0: i32) -> (i32, i32) {
    %c0_i32 = arith.constant 0 : i32
    %c0_i32_0 = arith.constant 0 : i32
    %c0_i32_1 = arith.constant 0 : i32
    return %c0_i32, %c0_i32_0 : i32, i32
  }
  func.func @transform_17(%arg0: i32) -> (i32, i32) {
    %c0_i32 = arith.constant 0 : i32
    %c0_i32_0 = arith.constant 0 : i32
    %c0_i32_1 = arith.constant 0 : i32
    return %c0_i32, %c0_i32_0 : i32, i32
  }
  func.func @transform_18(%arg0: i32) -> (i32, i32) {
    %c0_i32 = arith.constant 0 : i32
    %c0_i32_0 = arith.constant 0 : i32
    %c0_i32_1 = arith.constant 0 : i32
    return %c0_i32, %c0_i32_0 : i32, i32
  }
  func.func @transform_19(%arg0: i32) -> (i32, i32) {
    %c0_i32 = arith.constant 0 : i32
    %c0_i32_0 = arith.constant 0 : i32
    %c0_i32_1 = arith.constant 0 : i32
    return %c0_i32, %c0_i32_0 : i32, i32
  }
  func.func @transform_20(%arg0: i32) -> (i32, i32) {
    %c0_i32 = arith.constant 0 : i32
    %c0_i32_0 = arith.constant 0 : i32
    %c0_i32_1 = arith.constant 0 : i32
    return %c0_i32, %c0_i32_0 : i32, i32
  }
  func.func @transform_21(%arg0: i32) -> (i32, i32) {
    %c0_i32 = arith.constant 0 : i32
    %c0_i32_0 = arith.constant 0 : i32
    %c0_i32_1 = arith.constant 0 : i32
    return %c0_i32, %c0_i32_0 : i32, i32
  }
  func.func @transform_22(%arg0: i32) -> (i32, i32, i32) {
    %c0_i32 = arith.constant 0 : i32
    %c0_i32_0 = arith.constant 0 : i32
    %c0_i32_1 = arith.constant 0 : i32
    %c0_i32_2 = arith.constant 0 : i32
    return %c0_i32, %c0_i32_0, %c0_i32_1 : i32, i32, i32
  }
  func.func @transform_23(%arg0: i32) -> (i32, i32, i32) {
    %c0_i32 = arith.constant 0 : i32
    %c0_i32_0 = arith.constant 0 : i32
    %c0_i32_1 = arith.constant 0 : i32
    %c0_i32_2 = arith.constant 0 : i32
    return %c0_i32, %c0_i32_0, %c0_i32_1 : i32, i32, i32
  }
  func.func @transform_24(%arg0: i32) -> (i32, i32, i32) {
    %c0_i32 = arith.constant 0 : i32
    %c0_i32_0 = arith.constant 0 : i32
    %c0_i32_1 = arith.constant 0 : i32
    %c0_i32_2 = arith.constant 0 : i32
    return %c0_i32, %c0_i32_0, %c0_i32_1 : i32, i32, i32
  }
  func.func @transform_25(%arg0: i32) -> (i32, i32, i32) {
    %c0_i32 = arith.constant 0 : i32
    %c0_i32_0 = arith.constant 0 : i32
    %c0_i32_1 = arith.constant 0 : i32
    %c0_i32_2 = arith.constant 0 : i32
    return %c0_i32, %c0_i32_0, %c0_i32_1 : i32, i32, i32
  }
  func.func @transform_26(%arg0: i32) -> (i32, i32, i32) {
    %c0_i32 = arith.constant 0 : i32
    %c0_i32_0 = arith.constant 0 : i32
    %c0_i32_1 = arith.constant 0 : i32
    %c0_i32_2 = arith.constant 0 : i32
    return %c0_i32, %c0_i32_0, %c0_i32_1 : i32, i32, i32
  }
  func.func @transform_27(%arg0: i32) -> (i32, i32, i32) {
    %c0_i32 = arith.constant 0 : i32
    %c0_i32_0 = arith.constant 0 : i32
    %c0_i32_1 = arith.constant 0 : i32
    %c0_i32_2 = arith.constant 0 : i32
    return %c0_i32, %c0_i32_0, %c0_i32_1 : i32, i32, i32
  }
  func.func @transform_28(%arg0: i32) -> (i32, i32, i32) {
    %c0_i32 = arith.constant 0 : i32
    %c0_i32_0 = arith.constant 0 : i32
    %c0_i32_1 = arith.constant 0 : i32
    %c0_i32_2 = arith.constant 0 : i32
    return %c0_i32, %c0_i32_0, %c0_i32_1 : i32, i32, i32
  }
  func.func @transform_29(%arg0: i32) -> (i32, i32) {
    %c0_i32 = arith.constant 0 : i32
    %c0_i32_0 = arith.constant 0 : i32
    %c0_i32_1 = arith.constant 0 : i32
    return %c0_i32, %c0_i32_0 : i32, i32
  }
  func.func @transform_30(%arg0: i32) -> (i32, i32) {
    %c0_i32 = arith.constant 0 : i32
    %c0_i32_0 = arith.constant 0 : i32
    %c0_i32_1 = arith.constant 0 : i32
    return %c0_i32, %c0_i32_0 : i32, i32
  }
  func.func @transform_31(%arg0: i32) -> (i32, i32) {
    %c0_i32 = arith.constant 0 : i32
    %c0_i32_0 = arith.constant 0 : i32
    %c0_i32_1 = arith.constant 0 : i32
    return %c0_i32, %c0_i32_0 : i32, i32
  }
  func.func @transform_32(%arg0: i32) -> (i32, i32) {
    %c0_i32 = arith.constant 0 : i32
    %c0_i32_0 = arith.constant 0 : i32
    %c0_i32_1 = arith.constant 0 : i32
    return %c0_i32, %c0_i32_0 : i32, i32
  }
  func.func @transform_33(%arg0: i32) -> (i32, i32) {
    %c0_i32 = arith.constant 0 : i32
    %c0_i32_0 = arith.constant 0 : i32
    %c0_i32_1 = arith.constant 0 : i32
    return %c0_i32, %c0_i32_0 : i32, i32
  }
  func.func @transform_34(%arg0: i32) -> (i32, i32) {
    %c0_i32 = arith.constant 0 : i32
    %c0_i32_0 = arith.constant 0 : i32
    %c0_i32_1 = arith.constant 0 : i32
    return %c0_i32, %c0_i32_0 : i32, i32
  }
  func.func @transform_35(%arg0: i32) -> (i32, i32) {
    %c0_i32 = arith.constant 0 : i32
    %c0_i32_0 = arith.constant 0 : i32
    %c0_i32_1 = arith.constant 0 : i32
    return %c0_i32, %c0_i32_0 : i32, i32
  }
  func.func @transform_36(%arg0: i32) -> (i32, i32) {
    %c0_i32 = arith.constant 0 : i32
    %c0_i32_0 = arith.constant 0 : i32
    %c0_i32_1 = arith.constant 0 : i32
    return %c0_i32, %c0_i32_0 : i32, i32
  }
  func.func @transform_37(%arg0: i32) -> (i32, i32) {
    %c0_i32 = arith.constant 0 : i32
    %c0_i32_0 = arith.constant 0 : i32
    %c0_i32_1 = arith.constant 0 : i32
    return %c0_i32, %c0_i32_0 : i32, i32
  }
  func.func @transform_38(%arg0: i32) -> (i32, i32) {
    %c0_i32 = arith.constant 0 : i32
    %c0_i32_0 = arith.constant 0 : i32
    %c0_i32_1 = arith.constant 0 : i32
    return %c0_i32, %c0_i32_0 : i32, i32
  }
  func.func @transform_39(%arg0: i32) -> (i32, i32, i32) {
    %c0_i32 = arith.constant 0 : i32
    %c0_i32_0 = arith.constant 0 : i32
    %c0_i32_1 = arith.constant 0 : i32
    return %arg0, %c0_i32, %c0_i32_0 : i32, i32, i32
  }
}

</mosaic_0001>

<bundles_post_ra>
// kernel: net_forward.1
= control target key start
LH: loop header
LB: loop body
LE: loop exit
PB: predicated region body
PF: predicated region fallthrough
CT: control target
= control target key end

     0   :  { %s4075_s6 = smov 1   ;;  %s4076_s10 = smov 2   ;;  %s4786_s0 = inlined_call_operand.smem [shape: u32[40], index: -1, kind: input, shape index: {}] }
   0x1   :  { %s4126_s5 = sld [smem:[%s4786_s0]]   ;;  %s4077_s14 = smov 3  }
   0x2   :  { %s4131_s9 = sld [smem:[%s4786_s0 + %s4075_s6]]   ;;  %s4078_s18 = smov 4  }
   0x3   :  { %s4136_s13 = sld [smem:[%s4786_s0 + %s4076_s10]]   ;;  %s4079_s22 = smov 5  }
   0x4   :  { %s4141_s17 = sld [smem:[%s4786_s0 + %s4077_s14]]   ;;  %s4080_s26 = smov 6  }
   0x5   :  { %s4146_s21 = sld [smem:[%s4786_s0 + %s4078_s18]]   ;;  %s4081_s30 = smov 7  }
   0x6   :  { %s4151_s25 = sld [smem:[%s4786_s0 + %s4079_s22]]   ;;  %s4082_s4 = smov 8  }
   0x7   :  { %4809 = sst [smem:[#allocation5_spill]] %s4126_s5  ;;  %s4083_s10 = smov 9  }
   0x8   :  { %4810 = sst [smem:[#allocation6_spill]] %s4131_s9  ;;  %s4084_s15 = smov 10  }
   0x9   :  { %4811 = sst [smem:[#allocation7_spill]] %s4136_s13  ;;  %s4085_s20 = smov 11  }
   0xa   :  { %s4156_s29 = sld [smem:[%s4786_s0 + %s4080_s26]]   ;;  %s4086_s26 = smov 12  }
   0xb   :  { %s4161_s3 = sld [smem:[%s4786_s0 + %s4081_s30]]   ;;  %s4087_s1 = smov 13  }
   0xc   :  { %s4166_s8 = sld [smem:[%s4786_s0 + %s4082_s4]]   ;;  %s4088_s7 = smov 14  }
   0xd   :  { %s4171_s14 = sld [smem:[%s4786_s0 + %s4083_s10]]   ;;  %s4090_s22 = smov 16  }
   0xe   :  { %s4176_s19 = sld [smem:[%s4786_s0 + %s4084_s15]]   ;;  %s4089_s15 = smov 15  }
   0xf   :  { %s4181_s24 = sld [smem:[%s4786_s0 + %s4085_s20]]   ;;  %s4091_s28 = smov 17  }
  0x10   :  { %s4186_s30 = sld [smem:[%s4786_s0 + %s4086_s26]]  }
  0x11   :  { %4812 = sst [smem:[#allocation8_spill]] %s4161_s3 }
  0x12   :  { %4813 = sst [smem:[#allocation9_spill]] %s4166_s8 }
  0x13   :  { %s4191_s6 = sld [smem:[%s4786_s0 + %s4087_s1]]  }
  0x14   :  { %s4196_s12 = sld [smem:[%s4786_s0 + %s4088_s7]]   ;;  %s4092_s7 = smov 18  }
  0x15   :  { %s4201_s20 = sld [smem:[%s4786_s0 + %s4089_s15]]   ;;  %s4093_s15 = smov 19  }
  0x16   :  { %s4206_s27 = sld [smem:[%s4786_s0 + %s4090_s22]]   ;;  %s4094_s22 = smov 20  }
  0x17   :  { %s4211_s4 = sld [smem:[%s4786_s0 + %s4091_s28]]   ;;  %s4095_s28 = smov 21  }
  0x18   :  { %s4216_s9 = sld [smem:[%s4786_s0 + %s4092_s7]]   ;;  %s4096_s7 = smov 22  }
  0x19   :  { %4814 = sst [smem:[#allocation10_spill]] %s4191_s6 }
  0x1a   :  { %4815 = sst [smem:[#allocation11_spill]] %s4196_s12 }
  0x1b   :  { %4816 = sst [smem:[#allocation12_spill]] %s4201_s20 }
  0x1c   :  { %s4221_s20 = sld [smem:[%s4786_s0 + %s4093_s15]]   ;;  %s4097_s15 = smov 23  }
  0x1d   :  { %4817 = sst [smem:[#allocation13_spill]] %s4211_s4 }
  0x1e   :  { %4818 = sst [smem:[#allocation14_spill]] %s4216_s9 }
  0x1f   :  { %s4226_s12 = sld [smem:[%s4786_s0 + %s4094_s22]]   ;;  %s4098_s22 = smov 24  }
  0x20   :  { %s4231_s4 = sld [smem:[%s4786_s0 + %s4095_s28]]   ;;  %s4099_s28 = smov 25  }
  0x21   :  { %s4236_s9 = sld [smem:[%s4786_s0 + %s4096_s7]]   ;;  %s4100_s7 = smov 26  }
  0x22   :  { %4819 = sst [smem:[#allocation15_spill]] %s4221_s20 }
  0x23   :  { %s4241_s20 = sld [smem:[%s4786_s0 + %s4097_s15]]   ;;  %s4101_s15 = smov 27  }
  0x25   :  { %4820 = sst [smem:[#allocation16_spill]] %s4226_s12 }
  0x26   :  { %4821 = sst [smem:[#allocation17_spill]] %s4231_s4 }
  0x27   :  { %4822 = sst [smem:[#allocation18_spill]] %s4236_s9 }
  0x28   :  { %s4246_s12 = sld [smem:[%s4786_s0 + %s4098_s22]]   ;;  %s4102_s22 = smov 28  }
  0x29   :  { %4823 = sst [smem:[#allocation19_spill]] %s4241_s20 }
  0x2a   :  { %s4251_s4 = sld [smem:[%s4786_s0 + %s4099_s28]]   ;;  %s4103_s28 = smov 29  }
  0x2b   :  { %s4256_s9 = sld [smem:[%s4786_s0 + %s4100_s7]]   ;;  %s4104_s7 = smov 30  }
  0x2c   :  { %s4261_s20 = sld [smem:[%s4786_s0 + %s4101_s15]]   ;;  %s4105_s15 = smov 31  }
  0x2e   :  { %4824 = sst [smem:[#allocation20_spill]] %s4246_s12 }
  0x2f   :  { %s4266_s12 = sld [smem:[%s4786_s0 + %s4102_s22]]   ;;  %s4106_s22 = smov 32  }
  0x30   :  { %4825 = sst [smem:[#allocation21_spill]] %s4251_s4 }
  0x31   :  { %4826 = sst [smem:[#allocation22_spill]] %s4256_s9 }
  0x32   :  { %4827 = sst [smem:[#allocation23_spill]] %s4261_s20 }
  0x33   :  { %s4271_s4 = sld [smem:[%s4786_s0 + %s4103_s28]]   ;;  %s4107_s28 = smov 33  }
  0x34   :  { %s4276_s9 = sld [smem:[%s4786_s0 + %s4104_s7]]   ;;  %s4108_s7 = smov 34  }
  0x35   :  { %4828 = sst [smem:[#allocation24_spill]] %s4266_s12 }
  0x36   :  { %s4281_s20 = sld [smem:[%s4786_s0 + %s4105_s15]]   ;;  %s4109_s15 = smov 35  }
  0x37   :  { %s4286_s12 = sld [smem:[%s4786_s0 + %s4106_s22]]   ;;  %s4110_s22 = smov 36  }
  0x39   :  { %4829 = sst [smem:[#allocation25_spill]] %s4271_s4 }
  0x3a   :  { %4830 = sst [smem:[#allocation26_spill]] %s4276_s9 }
  0x3b   :  { %s4291_s4 = sld [smem:[%s4786_s0 + %s4107_s28]]   ;;  %s4111_s28 = smov 37  }
  0x3c   :  { %4831 = sst [smem:[#allocation27_spill]] %s4281_s20 }
  0x3d   :  { %4832 = sst [smem:[#allocation28_spill]] %s4286_s12 }
  0x3e   :  { %s4296_s9 = sld [smem:[%s4786_s0 + %s4108_s7]]   ;;  %s4112_s7 = smov 38  }
  0x3f   :  { %s4301_s20 = sld [smem:[%s4786_s0 + %s4109_s15]]   ;;  %s4113_s15 = smov 39  }
  0x40   :  { %s4306_s12 = sld [smem:[%s4786_s0 + %s4110_s22]]  }
  0x41   :  { %4833 = sst [smem:[#allocation29_spill]] %s4291_s4 }
  0x42   :  { %s4311_s4 = sld [smem:[%s4786_s0 + %s4111_s28]]  }
  0x44   :  { %4834 = sst [smem:[#allocation30_spill]] %s4296_s9 }
  0x45   :  { %4835 = sst [smem:[#allocation31_spill]] %s4301_s20 }
  0x46   :  { %s4316_s9 = sld [smem:[%s4786_s0 + %s4112_s7]]  }
  0x47   :  { %s4321_s20 = sld [smem:[%s4786_s0 + %s4113_s15]]  }
  0x48   :  { %4836 = sst [smem:[#allocation32_spill]] %s4311_s4 }
  0x4c   :  { %4837 = sst [smem:[#allocation33_spill]] %s4316_s9 }
  0x4d   :  { %84 = vsyncpa [#allocation3], 0 }
  0x4e   :  { %86 = vsyncpa [#allocation3 + $0x1], 0  ;;  %s4323_s22 = smov 0   ;;  %s4325_s23 = smov 0  }
  0x4f   :  { %s4327_s26 = smov 0   ;;  %s4329_s28 = smov 0  }
  0x50 LB: > { %s4838_s4 = sld [smem:[#allocation32_spill]]  ;;  %s4344_s0 = sadd.s32 4294967295, %s4073_s28   ;;  %s4073_s28 = sphi %s4329_s28, %s4872_s28   ;;  %s4069_s26 = sphi %s4327_s26, %s4871_s26   ;;  %s4065_s23 = sphi %s4325_s23, %s4870_s23   ;;  %s4061_s22 = sphi %s4323_s22, %s4869_s22  }
  0x51   : > { %s4839_s13 = sld [smem:[#allocation7_spill]]  ;;  %s3439_s1 = sadd.s32 4294967294, %s4073_s28  }
  0x52   : > { %s4840_s8 = sld [smem:[#allocation9_spill]]  ;;  %s4348_s2 = sadd.s32 1, %s4073_s28  }
  0x53   : > { %s4841_s3 = sld [smem:[#allocation8_spill]]  ;;  %s928_s7 = sadd.s32 1, %s4069_s26 }
  0x54   : > { %s925_s10 = ssub.s32 %s4073_s28, %s4348_s2  ;;  %p938_p0 = scmp.ne.s32.totalorder %s4069_s26, %s4065_s23 }
  0x55   : > { %p926_p1 = scmp.eq.s32.totalorder %s925_s10, 0  ;;  %p939_p2 = scmp.eq.s32.totalorder %s4344_s0, 1 }
  0x56   : > { %p944_p3 = scmp.ne.s32.totalorder %s4065_s23, %s4061_s22  ;;  %p945_p4 = scmp.eq.s32.totalorder %s3439_s1, 1 }
  0x57   : > { %s4359_s11 = scalar_select %p926_p1, %s4069_s26, %s928_s7  }
  0x58   : > { %p4361_p5 = por %p939_p2, %p938_p0  ;;  %p4365_p6 = por %p945_p4, %p944_p3 }
  0x59   : > { %p3442_p7 = scmp.ge.s32.totalorder %s4073_s28, 1  ;;  %p1089_p8 = scmp.lt.s32.totalorder %s4073_s28, 3 }
  0x5b   : > { %p1090_p9 = pnand %p3442_p7, %p1089_p8 }
  0x5c   : > { %s4844_s5 = sld [smem:[#allocation5_spill]] (!%p1090_p9)  ;;  %p1188_p10 = scmp.lt.s32.totalorder (!%p1090_p9), %s4344_s0, 1 }
  0x5d   : > { %1093 = sbr.rel (%p1090_p9) target bundleno = 6146 (0x1802), region = 176  ;;  %s4845_s6 = sld [smem:[#allocation10_spill]] (!%p1090_p9) }
  0x5e   : > { %s4846_s10 = sld [smem:[#allocation11_spill]] (!%p1090_p9) }
  0x5f   : > { %s4868_s9 = sld [smem:[#allocation33_spill]] (!%p1090_p9) }
  0x62   : > { %v1218_v0 = vld [vmem:[%s4839_s13 + $0x70] sm:$0xff]  ;;  %v1219_v1 = vld [vmem:[%s4839_s13 + $0x78] sm:$0xff]  ;;  %v1216_v2 = vld [vmem:[%s4839_s13 + $0x60] sm:$0xff]  ;;  %v4114_v3 = vmov 0   ;;  %s4378_s18 = scalar_select %p1188_p10, %s4344_s0, 1  ;;  %vm1247_vm0 = vcmask 523264  }
  0x63   : > { %1254 = vmatprep.subr.bf16.mxu0 %v4114_v3  ;;  %v1239_v4 = vpack.c.bf16 %v1219_v1, %v1218_v0  ;;  %v1217_v5 = vld [vmem:[%s4839_s13 + $0x68] sm:$0xff]  ;;  %v1214_v7 = vld [vmem:[%s4839_s13 + $0x50] sm:$0xff]  ;;  %v1215_v8 = vld [vmem:[%s4839_s13 + $0x58] sm:$0xff]  ;;  %vm1304_vm1 = vcmask 261120   ;;  %vm1311_vm2 = vcmask 253952   ;;  %vm1560_vm3 = vcmask 130048  }
  0x64   : > { %v1238_v6 = vpack.c.bf16 %v1217_v5, %v1216_v2  ;;  %s3877_s1 = smul.u32 48, %s4378_s18  ;;  %v1237_v9 = vpack.c.bf16 %v1215_v8, %v1214_v7  ;;  %v1212_v10 = vld [vmem:[%s4839_s13 + $0x40] sm:$0xff]  ;;  %v1213_v11 = vld [vmem:[%s4839_s13 + $0x48] sm:$0xff]  ;;  %v1210_v16 = vld [vmem:[%s4839_s13 + $0x30] sm:$0xff]  ;;  %vm1669_vm4 = vcmask 1040384   ;;  %vm1624_vm5 = vcmask 138240  }
  0x65   : > { %1255 = vmatpush1.bf16.msra.mxu0 %v1239_v4  ;;  %v1236_v15 = vpack.c.bf16 %v1213_v11, %v1212_v10  ;;  %v1211_v17 = vld [vmem:[%s4839_s13 + $0x38] sm:$0xff]  ;;  %v1208_v19 = vld [vmem:[%s4839_s13 + $0x20] sm:$0xff]  ;;  %v1209_v20 = vld [vmem:[%s4839_s13 + $0x28] sm:$0xff]  ;;  %vm1631_vm6 = vcmask 131072   ;;  %vm4116_vm7 = vmmov 0   ;;  %vm2675_vm8 = vcmask 57344  }
  0x66   : > { %1256 = vmatprep.subr.bf16.mxu0 %v4114_v3  ;;  %s4385_s7 = scalar_lea.vmem %s4844_s5, %s3877_s1  ;;  %v1235_v18 = vpack.c.bf16 %v1211_v17, %v1210_v16  ;;  %v1234_v21 = vpack.c.bf16 %v1209_v20, %v1208_v19  ;;  %v1206_v22 = vld [vmem:[%s4839_s13 + $0x10] sm:$0xff]  ;;  %v1207_v23 = vld [vmem:[%s4839_s13 + $0x18] sm:$0xff]  ;;  %v1204_v25 = vld [vmem:[%s4839_s13] sm:$0xff]  ;;  %s4847_s1 = sld [smem:[#allocation12_spill]]  ;;  %vm2693_vm9 = vcmask 1043456   ;;  %vm2689_vm10 = vcmask 64512  }
  0x67   : > { %v1199_v12 = vld [vmem:[%s4385_s7 + $0x8] sm:$0xff]  ;;  %v1201_v13 = vld [vmem:[%s4385_s7 + $0x18] sm:$0xff]  ;;  %v1233_v24 = vpack.c.bf16 %v1207_v23, %v1206_v22  ;;  %v1226_v28 = vld [vmem:[%s4839_s13 + $0xb0] sm:$0xff]  ;;  %s4854_s5 = sld [smem:[#allocation20_spill]]  ;;  %vm3318_vm11 = vcmask 32768  }
  0x68   : > { %v1229_v14 = vpack.c.bf16 %v1201_v13, %v1199_v12  ;;  %v1205_v26 = vld [vmem:[%s4839_s13 + $0x8] sm:$0xff]  ;;  %v1227_v29 = vld [vmem:[%s4839_s13 + $0xb8] sm:$0xff]  ;;  %v1224_v31 = vld [vmem:[%s4839_s13 + $0xa0] sm:$0xff] }
  0x69   : > { %1257 = vmatpush1.bf16.msra.mxu0 %v1238_v6  ;;  %v1232_v27 = vpack.c.bf16 %v1205_v26, %v1204_v25  ;;  %v1243_v30 = vpack.c.bf16 %v1227_v29, %v1226_v28  ;;  %v1225_v32 = vld [vmem:[%s4839_s13 + $0xa8] sm:$0xff]  ;;  %v1222_v34 = vld [vmem:[%s4839_s13 + $0x90] sm:$0xff]  ;;  %v1223_v35 = vld [vmem:[%s4839_s13 + $0x98] sm:$0xff] }
  0x6a   : > { %1258 = vmatprep.subr.bf16.mxu0 %v4114_v3  ;;  %3445 = vmatprep.mubr.msk.bf16.mxu0 %vm1247_vm0, %v1229_v14  ;;  %v1242_v33 = vpack.c.bf16 %v1225_v32, %v1224_v31  ;;  %v1241_v36 = vpack.c.bf16 %v1223_v35, %v1222_v34  ;;  %v1220_v37 = vld [vmem:[%s4839_s13 + $0x80] sm:$0xff]  ;;  %v1221_v38 = vld [vmem:[%s4839_s13 + $0x88] sm:$0xff]  ;;  %v1200_v41 = vld [vmem:[%s4385_s7 + $0x10] sm:$0xff]  ;;  %s4856_s13 = sld [smem:[#allocation21_spill]] }
  0x6b   : > { %v1240_v39 = vpack.c.bf16 %v1221_v38, %v1220_v37  ;;  %v1198_v40 = vld [vmem:[%s4385_s7] sm:$0xff]  ;;  %v1203_v42 = vld [vmem:[%s4385_s7 + $0x28] sm:$0x1]  ;;  %v1246_v56 = vld [vmem:[%s4141_s17 + $0x10] sm:$0x1] }
  0x6c   : > { %v1228_v43 = vpack.c.bf16 %v1200_v41, %v1198_v40  ;;  %v1231_v44 = vpack.c.bf16 %v1203_v42, %v1203_v42  ;;  %v1202_v45 = vld [vmem:[%s4385_s7 + $0x20] sm:$0x1]  ;;  %v1245_v51 = vld [vmem:[%s4141_s17 + $0x8] sm:$0xff]  ;;  %v1367_v16 = vld [vmem:[%s4156_s29 + $0x10] sm:$0xff]  ;;  %s4848_s7 = sld [smem:[#allocation14_spill]] }
  0x6d   : > { %1259 = vmatpush1.bf16.msra.mxu0 %v1237_v9  ;;  %v1230_v46 = vpack.c.bf16 %v1202_v45, %v1202_v45  ;;  %v1244_v47 = vld [vmem:[%s4141_s17] sm:$0xff]  ;;  %v1368_v17 = vld [vmem:[%s4156_s29 + $0x18] sm:$0xff]  ;;  %v1366_v23 = vld [vmem:[%s4156_s29 + $0x8] sm:$0xff] }
  0x6e   : > { %1260 = vmatprep.subr.bf16.mxu0 %v4114_v3  ;;  %v1372_v19 = vpack.c.bf16 %v1368_v17, %v1367_v16  ;;  %v3473_v20 = vld [vmem:[%s4840_s8 + $0x38] sm:$0xff]  ;;  %v1365_v22 = vld [vmem:[%s4156_s29] sm:$0xff]  ;;  %v3471_v26 = vld [vmem:[%s4840_s8 + $0x28] sm:$0xff] }
  0x6f   : > { %v1371_v25 = vpack.c.bf16 %v1366_v23, %v1365_v22  ;;  %v1436_v28 = vld [vmem:[%s4840_s8 + $0x10] sm:$0xff]  ;;  %v1437_v29 = vld [vmem:[%s4840_s8 + $0x18] sm:$0xff]  ;;  %v3447_v42 = vld [vmem:[%s4146_s21] ss:$0 sm:$0xff] }
  0x70   : > { %3645 = vmatprep.subr.bf16.mxu1 %v1372_v19 }
  0x71   : > { %1261 = vmatpush1.bf16.msra.mxu0 %v1236_v15  ;;  %3646 = vmatpush3.bf16.msra.mxu1 %v1372_v19 }
  0x72   : > { %1262 = vmatprep.subr.bf16.mxu0 %v4114_v3  ;;  %3647 = vmatprep.subr.bf16.mxu1 %v1371_v25 }
  0x75   : > { %1263 = vmatpush1.bf16.msra.mxu0 %v1235_v18  ;;  %v3472_v18 = vld [vmem:[%s4840_s8 + $0x30] sm:$0xff]  ;;  %3648 = vmatpush3.bf16.msra.mxu1 %v1371_v25 }
  0x76   : > { %1264 = vmatprep.subr.bf16.mxu0 %v4114_v3 }
  0x79   : > { %1265 = vmatpush1.bf16.msra.mxu0 %v1234_v21  ;;  %v1797_v21 = vpack.c.bf16 %v3473_v20, %v3472_v18  ;;  %v3452_v18 = vld [vmem:[%s4171_s14] ss:$0 sm:$0xff] }
  0x7a   : > { %1266 = vmatprep.subr.bf16.mxu0 %v4114_v3 }
  0x7d   : > { %1267 = vmatpush1.bf16.msra.mxu0 %v1233_v24  ;;  %v3470_v24 = vld [vmem:[%s4840_s8 + $0x20] sm:$0xff] }
  0x7e   : > { %1268 = vmatprep.subr.bf16.mxu0 %v4114_v3 }
  0x81   : > { %1269 = vmatpush1.bf16.msra.mxu0 %v1232_v27  ;;  %v1796_v27 = vpack.c.bf16 %v3471_v26, %v3470_v24 }
  0x82   : > { %1278 = vmatprep.subr.bf16.mxu0 %v4114_v3 }
  0x85   : > { %1279 = vmatpush2.bf16.msra.mxu0 %v1243_v30  ;;  %v1439_v30 = vpack.c.bf16 %v1437_v29, %v1436_v28 }
  0x86   : > { %1280 = vmatprep.subr.bf16.mxu0 %v4114_v3 }
  0x87   : > { %3653 = vmatprep.subr.bf16.mxu1 %v1439_v30 }
  0x89   : > { %1281 = vmatpush2.bf16.msra.mxu0 %v1242_v33 }
  0x8a   : > { %1282 = vmatprep.subr.bf16.mxu0 %v4114_v3 }
  0x8d   : > { %1283 = vmatpush2.bf16.msra.mxu0 %v1241_v36 }
  0x8e   : > { %1284 = vmatprep.subr.bf16.mxu0 %v4114_v3 }
  0x91   : > { %1285 = vmatpush2.bf16.msra.mxu0 %v1240_v39 }
  0x92   : > { %3693 = vmatprep.subr.bf16.mxu0 %v1797_v21 }
  0x94   : > { %1287 = vmatmul.mubr.bf16.vlgmr.msra.gmra.mxu0 %v1228_v43 }
  0x95   : > { %3446 = vmatprep.mubr.msk.bf16.mxu0 %vm1247_vm0, %v1231_v44  ;;  %3694 = vmatpush3.bf16.msra.mxu0 %v1797_v21 }
  0x96   : > { %3695 = vmatprep.subr.bf16.mxu0 %v1796_v27 }
  0x99   : > { %3696 = vmatpush3.bf16.msra.mxu0 %v1796_v27 }
  0x9c   : > { %1295 = vmatmul.mubr.bf16.gmra.mxu0 %v1230_v46  ;;  %v3448_v46 = vld [vmem:[%s4151_s25] ss:$0 sm:$0xff] }
 0x154   : > { %v1288_v48 = vpop.f32.mrf.mxu0 }
 0x155   : > { %v4424_v49 = vadd.f32 %v1288_v48, %v1244_v47 }
 0x156   : > { %v1290_v50 = vpop.f32.mrf.mxu0 }
 0x157   : > { %v1305_v52 = vsel %vm1304_vm1, %v4424_v49, 0.0 }
 0x158   : > { %v1291_v53 = vpop.f32.mrf.mxu0  ;;  %1306 = vadd.xlane.f32.xlu0 %v1305_v52 }
 0x159   : > { %v4429_v54 = vadd.f32 %v1291_v53, %v1245_v51 }
 0x15a   : > { %v1293_v55 = vpop.f32.mrf.mxu0 }
 0x15b   : > { %v1308_v57 = vsel %vm1304_vm1, %v4429_v54, 0.0 }
 0x15c   : > { %v1296_v58 = vpop.f32.mrf.mxu0  ;;  %1309 = vadd.xlane.f32.xlu0 %v1308_v57  ;;  %v1435_v57 = vld [vmem:[%s4840_s8 + $0x8] sm:$0xff] }
 0x15d   : > { %v4434_v59 = vadd.f32 %v1296_v58, %v1246_v56  ;;  %v1434_v56 = vld [vmem:[%s4840_s8] sm:$0xff] }
 0x15e   : > { %v1298_v60 = vpop.f32.mrf.mxu0 }
 0x15f   : > { %v1312_v61 = vsel %vm1311_vm2, %v4434_v59, 0.0 }
 0x160   : > { %v1299_v62 = vpop.f32.mrf.mxu0  ;;  %1313 = vadd.xlane.f32.xlu1 %v1312_v61  ;;  %v1438_v61 = vpack.c.bf16 %v1435_v57, %v1434_v56 }
 0x161   : > { %v1497_v62 = vld [vmem:[%s4176_s19 + $0x10] sm:$0xff] }
 0x162   : > { %v1300_v63 = vpop.f32.mrf.mxu0 }
 0x163   : > { %v1498_v63 = vld [vmem:[%s4176_s19 + $0x18] sm:$0xff] }
 0x1e1   : > { %v1307_v0 = vpop.xlane.xlu0 %1306 }
 0x1e2   : > { %v1316_v1 = vmul.f32 0.03125, %v1307_v0  ;;  %v1500_v0 = vpack.c.bf16 %v1498_v63, %v1497_v62 }
 0x1e4   : > { %v1319_v2 = vsub.f32 %v4424_v49, %v1316_v1  ;;  %v1495_v1 = vld [vmem:[%s4176_s19] sm:$0xff] }
 0x1e5   : > { %v1310_v4 = vpop.xlane.xlu0 %1309 }
 0x1e6   : > { %v1317_v5 = vmul.f32 0.03125, %v1310_v4  ;;  %v1322_v6 = vmul.f32 %v1319_v2, %v1319_v2 }
 0x1e8   : > { %v1320_v7 = vsub.f32 %v4429_v54, %v1317_v5  ;;  %v1325_v8 = vsel %vm1304_vm1, %v1322_v6, 0.0  ;;  %v3475_v5 = vld [vmem:[%s4171_s14 + $0x1] ss:$0 sm:$0xff] }
 0x1e9   : > { %v1314_v9 = vpop.xlane.xlu1 %1313  ;;  %1326 = vadd.xlane.f32.xlu1 %v1325_v8 }
 0x1ea   : > { %v1318_v10 = vmul.f32 0.03125, %v1314_v9  ;;  %v1323_v11 = vmul.f32 %v1320_v7, %v1320_v7 }
 0x1ec   : > { %v1321_v12 = vsub.f32 %v4434_v59, %v1318_v10  ;;  %v1328_v13 = vsel %vm1304_vm1, %v1323_v11, 0.0 }
 0x1ed   : > { %1329 = vadd.xlane.f32.xlu0 %v1328_v13 }
 0x1ee   : > { %v1324_v14 = vmul.f32 %v1321_v12, %v1321_v12 }
 0x1f0   : > { %v1331_v15 = vsel %vm1311_vm2, %v1324_v14, 0.0 }
 0x1f1   : > { %1332 = vadd.xlane.f32.xlu1 %v1331_v15  ;;  %v3449_v15 = vld [vmem:[%s4841_s3] ss:$0 sm:$0xff] }
 0x272   : > { %v1327_v31 = vpop.xlane.xlu1 %1326 }
 0x273   : > { %v1334_v32 = vmul.f32 0.03125, %v1327_v31 }
 0x275   : > { %v1337_v33 = vadd.f32 1e-06, %v1334_v32 }
 0x276   : > { %v1330_v34 = vpop.xlane.xlu0 %1329 }
 0x277   : > { %3959 = vrsqrt.f32 %v1337_v33  ;;  %v1335_v35 = vmul.f32 0.03125, %v1330_v34  ;;  %v3455_v33 = vld [vmem:[%s4181_s24] ss:$0 sm:$0xff] }
 0x279   : > { %v1338_v36 = vadd.f32 1e-06, %v1335_v35 }
 0x27a   : > { %v1333_v37 = vpop.xlane.xlu1 %1332 }
 0x27b   : > { %3961 = vrsqrt.f32 %v1338_v36  ;;  %v1336_v38 = vmul.f32 0.03125, %v1333_v37 }
 0x27d   : > { %v1339_v39 = vadd.f32 1e-06, %v1336_v38 }
 0x27f   : > { %3963 = vrsqrt.f32 %v1339_v39  ;;  %v4494_v39 = vsel %vm1669_vm4, 65535, %v4114_v3 }
 0x284   : > { %v3960_v40 = vpop.eup %3959 }
 0x285   : > { %v1343_v41 = vmul.f32 %v3960_v40, %v1319_v2  ;;  %v1496_v2 = vld [vmem:[%s4176_s19 + $0x8] sm:$0xff] }
 0x286   : > { %v1499_v4 = vpack.c.bf16 %v1496_v2, %v1495_v1 }
 0x287   : > { %v1352_v44 = vmul.f32 %v3447_v42, %v1343_v41 }
 0x288   : > { %v3962_v43 = vpop.eup %3961 }
 0x289   : > { %v1344_v45 = vmul.f32 %v3962_v43, %v1320_v7  ;;  %v1361_v51 = vadd.f32 %v3448_v46, %v1352_v44 }
 0x28b   : > { %v1353_v47 = vmul.f32 %v3447_v42, %v1344_v45 }
 0x28c   : > { %v3964_v48 = vpop.eup %3963 }
 0x28d   : > { %v1345_v50 = vmul.f32 %v3964_v48, %v1321_v12  ;;  %v1362_v52 = vadd.f32 %v3448_v46, %v1353_v47 }
 0x28f   : > { %v1354_v53 = vmul.f32 %v3447_v42, %v1345_v50  ;;  %v4456_v55 = vpack.c.bf16 %v1362_v52, %v1361_v51 }
 0x291   : > { %3649 = vmatprep.mubr.msk.bf16.mxu1 %vm1304_vm1, %v4456_v55  ;;  %3697 = vmatprep.mubr.msk.bf16.mxu0 %vm1304_vm1, %v4456_v55  ;;  %v1363_v58 = vadd.f32 %v3448_v46, %v1354_v53 }
 0x293   : > { %v4464_v60 = vpack.c.bf16 %v1363_v58, %v1363_v58 }
 0x295   : > { %3650 = vmatmul.mubr.msk.bf16.vlgmr.msra.gmra.mxu1 %vm1304_vm1, %v4464_v60  ;;  %3698 = vmatmul.mubr.msk.bf16.vlgmr.msra.gmra.mxu0 %vm1304_vm1, %v4464_v60 }
 0x296   : > { %3654 = vmatpush3.bf16.msra.mxu1 %v1439_v30  ;;  %3657 = vmatprep.mubr.msk.bf16.mxu1 %vm1304_vm1, %v4456_v55 }
 0x297   : > { %3655 = vmatprep.subr.bf16.mxu1 %v1438_v61 }
 0x29a   : > { %3656 = vmatpush3.bf16.msra.mxu1 %v1438_v61 }
 0x29b   : > { %3661 = vmatprep.subr.bf16.mxu1 %v1500_v0 }
 0x29d   : > { %3658 = vmatmul.mubr.msk.bf16.vlgmr.msra.gmra.mxu1 %vm1304_vm1, %v4464_v60 }
 0x29e   : > { %3662 = vmatpush3.bf16.msra.mxu1 %v1500_v0  ;;  %3665 = vmatprep.mubr.msk.bf16.mxu1 %vm1304_vm1, %v4456_v55 }
 0x29f   : > { %3663 = vmatprep.subr.bf16.mxu1 %v1499_v4 }
 0x2a2   : > { %3664 = vmatpush3.bf16.msra.mxu1 %v1499_v4 }
 0x2a5   : > { %3666 = vmatmul.mubr.msk.bf16.vlgmr.msra.gmra.mxu1 %vm1304_vm1, %v4464_v60 }
 0x355   : > { %v3651_v6 = vpop.f32.mrf.mxu1  ;;  %v3699_v7 = vpop.f32.mrf.mxu0 }
 0x356   : > { %v1849_v8 = vadd.f32 %v3699_v7, %v3475_v5  ;;  %v1429_v46 = vadd.f32 %v3651_v6, %v3449_v15 }
 0x357   : > { %v1420_v9 = vpop.f32.mrf.mxu1  ;;  %v1840_v10 = vpop.f32.mrf.mxu0 }
 0x358   : > { %v1920_v11 = vpack.c.bf16 %v1849_v8, %v1849_v8  ;;  %v1421_v19 = vadd.f32 %v3449_v15, %v1420_v9  ;;  %v1841_v20 = vadd.f32 %v3475_v5, %v1840_v10  ;;  %v1557_v48 = vpack.c.bf16 %v1429_v46, %v1429_v46 }
 0x359   : > { %v3652_v12 = vpop.f32.mrf.mxu1  ;;  %v3700_v13 = vpop.f32.mrf.mxu0 }
 0x35a   : > { %v1931_v14 = vsel %vm1560_vm3, %v1920_v11, 0  ;;  %3875 = vmatprep.subr.msk.bf16.mxu0 %vm1560_vm3, %v1920_v11 }
 0x35b   : > { %v1423_v16 = vpop.f32.mrf.mxu1  ;;  %v1843_v17 = vpop.f32.mrf.mxu0  ;;  %3710 = vmatpush3.bf16.xpose.msra.mxu0 %v1931_v14 }
 0x35c   : > { %v1424_v21 = vadd.f32 %v3449_v15, %v1423_v16  ;;  %v1844_v22 = vadd.f32 %v3475_v5, %v1843_v17  ;;  %v3464_v17 = vld [vmem:[%s4156_s29 + $0x30] sm:$0xff] }
 0x35d   : > { %v3659_v23 = vpop.f32.mrf.mxu1 }
 0x35e   : > { %v1556_v24 = vpack.c.bf16 %v1424_v21, %v1421_v19  ;;  %v1919_v25 = vpack.c.bf16 %v1844_v22, %v1841_v20  ;;  %v1490_v26 = vadd.f32 %v3659_v23, %v3452_v18 }
 0x35f   : > { %v1481_v27 = vpop.f32.mrf.mxu1 }
 0x360   : > { %v1559_v28 = vpack.c.bf16 %v1490_v26, %v1490_v26  ;;  %3673 = vmatprep.mubr.msk.bf16.mxu1 %vm1560_vm3, %v1556_v24  ;;  %3876 = vmatprep.subr.msk.bf16.mxu0 %vm1560_vm3, %v1919_v25  ;;  %v1928_v31 = vsel %vm1560_vm3, %v1919_v25, 0  ;;  %v1482_v34 = vadd.f32 %v3452_v18, %v1481_v27 }
 0x361   : > { %v3660_v29 = vpop.f32.mrf.mxu1 }
 0x362   : > { %v1571_v30 = vsel %vm1560_vm3, %v1559_v28, 0  ;;  %3873 = vmatprep.subr.msk.bf16.mxu1 %vm1560_vm3, %v1559_v28  ;;  %v3462_v29 = vld [vmem:[%s4156_s29 + $0x20] sm:$0xff] }
 0x363   : > { %v1484_v32 = vpop.f32.mrf.mxu1  ;;  %3670 = vmatpush3.bf16.xpose.msra.mxu1 %v1571_v30  ;;  %3712 = vmatpush3.bf16.xpose.msra.mxu0 %v1928_v31  ;;  %v3463_v30 = vld [vmem:[%s4156_s29 + $0x28] sm:$0xff] }
 0x364   : > { %v1485_v35 = vadd.f32 %v3452_v18, %v1484_v32  ;;  %v3465_v18 = vld [vmem:[%s4156_s29 + $0x38] sm:$0xff] }
 0x365   : > { %v3667_v36 = vpop.f32.mrf.mxu1  ;;  %v1734_v19 = vpack.c.bf16 %v3465_v18, %v3464_v17 }
 0x366   : > { %v1558_v37 = vpack.c.bf16 %v1485_v35, %v1482_v34  ;;  %v1551_v38 = vadd.f32 %v3667_v36, %v3455_v33  ;;  %v3480_v34 = vld [vmem:[%s4176_s19 + $0x30] sm:$0xff]  ;;  %v3481_v35 = vld [vmem:[%s4176_s19 + $0x38] sm:$0xff] }
 0x367   : > { %v1542_v40 = vpop.f32.mrf.mxu1  ;;  %v1860_v36 = vpack.c.bf16 %v3481_v35, %v3480_v34 }
 0x368   : > { %v1662_v41 = vpack.c.bf16 %v1551_v38, %v1551_v38  ;;  %3874 = vmatprep.subr.msk.bf16.mxu1 %vm1560_vm3, %v1558_v37  ;;  %v1568_v44 = vsel %vm1560_vm3, %v1558_v37, 0  ;;  %v1543_v50 = vadd.f32 %v3455_v33, %v1542_v40  ;;  %v3478_v37 = vld [vmem:[%s4176_s19 + $0x20] sm:$0xff]  ;;  %v3479_v38 = vld [vmem:[%s4176_s19 + $0x28] sm:$0xff] }
 0x369   : > { %v3668_v42 = vpop.f32.mrf.mxu1  ;;  %v1859_v40 = vpack.c.bf16 %v3479_v38, %v3478_v37 }
 0x36a   : > { %v1673_v43 = vand.u32 %v4494_v39, %v1662_v41  ;;  %v1723_v41 = vld [vmem:[%s4186_s30] sm:$0xff]  ;;  %v1724_v42 = vld [vmem:[%s4186_s30 + $0x8] sm:$0xff] }
 0x36b   : > { %v1545_v45 = vpop.f32.mrf.mxu1  ;;  %3672 = vmatpush3.bf16.xpose.msra.mxu1 %v1568_v44 }
 0x36c   : > { %3677 = vmatprep.subr.bf16.mxu1 %v1673_v43  ;;  %v1546_v47 = vadd.f32 %v3455_v33, %v1545_v45  ;;  %v1733_v33 = vpack.c.bf16 %v3463_v30, %v3462_v29 }
 0x36e   : > { %v1661_v51 = vpack.c.bf16 %v1546_v47, %v1543_v50 }
 0x372   : > { %3674 = vmatmul.mubr.msk.bf16.vlgmr.msra.gmra.mxu1 %vm1560_vm3, %v1557_v48 }
 0x373   : > { %3678 = vmatpush3.bf16.msra.mxu1 %v1673_v43  ;;  %v1727_v43 = vpack.c.bf16 %v1724_v42, %v1723_v41 }
 0x374   : > { %3679 = vmatprep.subr.bf16.mxu1 %v1661_v51 }
 0x375   : > { %3731 = vmatprep.subr.bf16.mxu0 %v1727_v43 }
 0x377   : > { %3680 = vmatpush3.bf16.msra.mxu1 %v1661_v51  ;;  %v3467_v51 = vld [vmem:[%s4841_s3 + $0x1] ss:$0 sm:$0xff]  ;;  %s4853_s3 = sld [smem:[#allocation17_spill]] }
 0x378   : > { %3685 = vmatprep.subr.bf16.mxu1 %v1734_v19 }
 0x432   : > { %v3675_v3 = vpop.f32.mrf.mxu1 }
 0x433   : > { %v1623_v57 = vmul.f32 0.25, %v3675_v3 }
 0x434   : > { %v1607_v52 = vpop.f32.mrf.mxu1 }
 0x435   : > { %v1621_v53 = vmul.f32 0.25, %v1607_v52  ;;  %v1632_v63 = vsel %vm1631_vm6, %v1623_v57, -inf }
 0x436   : > { %v3676_v56 = vpop.f32.mrf.mxu1 }
 0x437   : > { %v1625_v58 = vsel %vm1624_vm5, %v1621_v53, -inf }
 0x438   : > { %1626 = vmax.xlane.f32.xlu0 %v1625_v58  ;;  %v1610_v61 = vpop.f32.mrf.mxu1 }
 0x439   : > { %v1622_v62 = vmul.f32 0.25, %v1610_v61 }
 0x43b   : > { %v1628_v0 = vsel %vm1624_vm5, %v1622_v62, -inf }
 0x43c   : > { %1633 = vmax.xlane.f32.xlu0 %v1632_v63  ;;  %1629 = vmax.xlane.f32.xlu1 %v1628_v0 }
 0x4c1   : > { %v1627_v1 = vpop.xlane.xlu0 %1626 }
 0x4c2   : > { %v1635_v2 = vsub.f32 %v1621_v53, %v1627_v1  ;;  %v3483_v53 = vld [vmem:[%s4181_s24 + $0x1] ss:$0 sm:$0xff] }
 0x4c4   : > { %v1638_v4 = vmul.f32 1.442695, %v1635_v2 }
 0x4c5   : > { %v1634_v5 = vpop.xlane.xlu0 %1633  ;;  %v1630_v6 = vpop.xlane.xlu1 %1629 }
 0x4c6   : > { %3965 = vpow2.f32 %v1638_v4  ;;  %v1637_v7 = vsub.f32 %v1623_v57, %v1634_v5  ;;  %v1636_v8 = vsub.f32 %v1622_v62, %v1630_v6 }
 0x4c8   : > { %v1642_v9 = vmul.f32 1.442695, %v1637_v7  ;;  %v1640_v10 = vmul.f32 1.442695, %v1636_v8 }
 0x4ca   : > { %3967 = vpow2.f32 %v1642_v9 }
 0x4cb   : > { %3969 = vpow2.f32 %v1640_v10 }
 0x4d3   : > { %v3966_v11 = vpop.eup %3965 }
 0x4d4   : > { %v1644_v12 = vsel %vm1624_vm5, %v3966_v11, 0.0 }
 0x4d5   : > { %1645 = vadd.xlane.f32.xlu1 %v1644_v12 }
 0x4d7   : > { %v3968_v13 = vpop.eup %3967 }
 0x4d8   : > { %v3970_v14 = vpop.eup %3969  ;;  %v1650_v15 = vsel %vm1631_vm6, %v3968_v13, 0.0 }
 0x4d9   : > { %1651 = vadd.xlane.f32.xlu1 %v1650_v15  ;;  %v1647_v16 = vsel %vm1624_vm5, %v3970_v14, 0.0 }
 0x4da   : > { %1648 = vadd.xlane.f32.xlu0 %v1647_v16 }
 0x55e   : > { %v1646_v20 = vpop.xlane.xlu1 %1645 }
 0x55f   : > { %3971 = vrcp.f32 %v1646_v20 }
 0x562   : > { %v1652_v21 = vpop.xlane.xlu1 %1651 }
 0x563   : > { %v1649_v22 = vpop.xlane.xlu0 %1648  ;;  %3973 = vrcp.f32 %v1652_v21 }
 0x564   : > { %3975 = vrcp.f32 %v1649_v22 }
 0x56c   : > { %v3972_v23 = vpop.eup %3971 }
 0x56d   : > { %v1656_v27 = vmul.f32 %v3972_v23, %v3966_v11 }
 0x570   : > { %v3974_v24 = vpop.eup %3973 }
 0x571   : > { %v3976_v25 = vpop.eup %3975  ;;  %v1658_v26 = vmul.f32 %v3974_v24, %v3968_v13 }
 0x572   : > { %v1657_v28 = vmul.f32 %v3976_v25, %v3970_v14 }
 0x573   : > { %v1660_v31 = vpack.c.bf16 %v1658_v26, %v1658_v26 }
 0x574   : > { %v1659_v32 = vpack.c.bf16 %v1657_v28, %v1656_v27 }
 0x576   : > { %3681 = vmatprep.mubr.msk.bf16.mxu1 %vm1624_vm5, %v1659_v32 }
 0x577   : > { %3682 = vmatmul.mubr.msk.bf16.vlgmr.msra.gmra.mxu1 %vm1624_vm5, %v1660_v31 }
 0x578   : > { %3686 = vmatpush3.bf16.msra.mxu1 %v1734_v19  ;;  %3689 = vmatprep.mubr.msk.bf16.mxu1 %vm1304_vm1, %v4456_v55 }
 0x579   : > { %3687 = vmatprep.subr.bf16.mxu1 %v1733_v33 }
 0x57c   : > { %3688 = vmatpush3.bf16.msra.mxu1 %v1733_v33 }
 0x57d   : > { %3701 = vmatprep.subr.bf16.mxu1 %v1860_v36 }
 0x57f   : > { %3690 = vmatmul.mubr.msk.bf16.vlgmr.msra.gmra.mxu1 %vm1304_vm1, %v4464_v60 }
 0x580   : > { %3702 = vmatpush3.bf16.msra.mxu1 %v1860_v36  ;;  %3705 = vmatprep.mubr.msk.bf16.mxu1 %vm1304_vm1, %v4456_v55 }
 0x581   : > { %3703 = vmatprep.subr.bf16.mxu1 %v1859_v40 }
 0x584   : > { %3704 = vmatpush3.bf16.msra.mxu1 %v1859_v40 }
 0x587   : > { %3706 = vmatmul.mubr.msk.bf16.vlgmr.msra.gmra.mxu1 %vm1304_vm1, %v4464_v60 }
 0x637   : > { %v3683_v44 = vpop.f32.mrf.mxu1 }
 0x638   : > { %v1726_v9 = vpack.c.bf16 %v3683_v44, %v3683_v44 }
 0x639   : > { %v1709_v45 = vpop.f32.mrf.mxu1 }
 0x63b   : > { %v3684_v46 = vpop.f32.mrf.mxu1 }
 0x63d   : > { %v1712_v47 = vpop.f32.mrf.mxu1 }
 0x63e   : > { %v1725_v0 = vpack.c.bf16 %v1712_v47, %v1709_v45 }
 0x63f   : > { %v3691_v48 = vpop.f32.mrf.mxu1 }
 0x640   : > { %v1786_v52 = vadd.f32 %v3691_v48, %v3467_v51 }
 0x641   : > { %v1777_v50 = vpop.f32.mrf.mxu1 }
 0x642   : > { %v1778_v56 = vadd.f32 %v3467_v51, %v1777_v50  ;;  %v1918_v62 = vpack.c.bf16 %v1786_v52, %v1786_v52  ;;  %v3490_v50 = vld [vmem:[%s4186_s30 + $0x10] sm:$0xff] }
 0x643   : > { %v3692_v3 = vpop.f32.mrf.mxu1 }
 0x645   : > { %v1780_v55 = vpop.f32.mrf.mxu1 }
 0x646   : > { %v1781_v57 = vadd.f32 %v3467_v51, %v1780_v55  ;;  %v3491_v51 = vld [vmem:[%s4186_s30 + $0x18] sm:$0xff] }
 0x647   : > { %v3707_v58 = vpop.f32.mrf.mxu1  ;;  %v2083_v3 = vpack.c.bf16 %v3491_v51, %v3490_v50  ;;  %v3498_v51 = vld [vmem:[%s4847_s1] ss:$0 sm:$0xff]  ;;  %s4850_s1 = sld [smem:[#allocation15_spill]] }
 0x648   : > { %v1917_v61 = vpack.c.bf16 %v1781_v57, %v1778_v56  ;;  %v1912_v60 = vadd.f32 %v3707_v58, %v3483_v53 }
 0x649   : > { %v1903_v63 = vpop.f32.mrf.mxu1 }
 0x64a   : > { %v2020_v1 = vpack.c.bf16 %v1912_v60, %v1912_v60  ;;  %3713 = vmatprep.mubr.msk.bf16.mxu0 %vm1560_vm3, %v1917_v61  ;;  %v1904_v6 = vadd.f32 %v3483_v53, %v1903_v63 }
 0x64b   : > { %v3708_v2 = vpop.f32.mrf.mxu1  ;;  %3714 = vmatmul.mubr.msk.bf16.vlgmr.msra.gmra.mxu0 %vm1560_vm3, %v1918_v62  ;;  %v3496_v62 = vld [vmem:[%s4845_s6] ss:$0 sm:$0xff]  ;;  %s4855_s6 = sld [smem:[#allocation6_spill]] }
 0x64c   : > { %v2028_v4 = vand.u32 %v2020_v1, %v4494_v39  ;;  %3733 = vmatprep.mubr.msk.bf16.mxu0 %vm1560_vm3, %v1725_v0  ;;  %3732 = vmatpush3.bf16.msra.mxu0 %v1727_v43 }
 0x64d   : > { %v1906_v5 = vpop.f32.mrf.mxu1 }
 0x64e   : > { %v1907_v7 = vadd.f32 %v3483_v53, %v1906_v5  ;;  %3717 = vmatprep.subr.bf16.mxu1 %v2028_v4 }
 0x64f   : > { %3718 = vmatpush3.bf16.msra.mxu1 %v2028_v4 }
 0x650   : > { %v2019_v8 = vpack.c.bf16 %v1907_v7, %v1904_v6 }
 0x652   : > { %3719 = vmatprep.subr.bf16.mxu1 %v2019_v8 }
 0x653   : > { %3720 = vmatpush3.bf16.msra.mxu1 %v2019_v8  ;;  %3734 = vmatmul.mubr.msk.bf16.vlgmr.msra.gmra.mxu0 %vm1560_vm3, %v1726_v9 }
 0x654   : > { %3725 = vmatprep.subr.bf16.mxu1 %v2083_v3 }
 0x70b   : > { %v3715_v10 = vpop.f32.mrf.mxu0 }
 0x70c   : > { %v1983_v14 = vmul.f32 0.25, %v3715_v10 }
 0x70d   : > { %v1967_v11 = vpop.f32.mrf.mxu0 }
 0x70e   : > { %v1981_v12 = vmul.f32 0.25, %v1967_v11  ;;  %v1990_v18 = vsel %vm1631_vm6, %v1983_v14, -inf }
 0x70f   : > { %v3716_v13 = vpop.f32.mrf.mxu0 }
 0x710   : > { %v1984_v39 = vsel %vm1624_vm5, %v1981_v12, -inf }
 0x711   : > { %1985 = vmax.xlane.f32.xlu0 %v1984_v39  ;;  %v1970_v15 = vpop.f32.mrf.mxu0 }
 0x712   : > { %v1982_v16 = vmul.f32 0.25, %v1970_v15 }
 0x713   : > { %v3735_v17 = vpop.f32.mrf.mxu0 }
 0x714   : > { %v1987_v19 = vsel %vm1624_vm5, %v1982_v16, -inf }
 0x715   : > { %1991 = vmax.xlane.f32.xlu0 %v1990_v18  ;;  %1988 = vmax.xlane.f32.xlu1 %v1987_v19  ;;  %v2178_v20 = vpop.f32.mrf.mxu0 }
 0x717   : > { %v3736_v21 = vpop.f32.mrf.mxu0 }
 0x719   : > { %v2181_v5 = vpop.f32.mrf.mxu0 }
 0x79a   : > { %v1986_v22 = vpop.xlane.xlu0 %1985 }
 0x79b   : > { %v1993_v23 = vsub.f32 %v1981_v12, %v1986_v22 }
 0x79d   : > { %v1996_v24 = vmul.f32 1.442695, %v1993_v23 }
 0x79e   : > { %v1992_v25 = vpop.xlane.xlu0 %1991  ;;  %v1989_v26 = vpop.xlane.xlu1 %1988 }
 0x79f   : > { %3977 = vpow2.f32 %v1996_v24  ;;  %v1995_v27 = vsub.f32 %v1983_v14, %v1992_v25  ;;  %v1994_v28 = vsub.f32 %v1982_v16, %v1989_v26  ;;  %v2265_v26 = vld [vmem:[%s4206_s27 + $0x10] sm:$0xff] }
 0x7a1   : > { %v2000_v29 = vmul.f32 1.442695, %v1995_v27  ;;  %v1998_v30 = vmul.f32 1.442695, %v1994_v28  ;;  %v2266_v27 = vld [vmem:[%s4206_s27 + $0x18] sm:$0xff] }
 0x7a2   : > { %v2270_v28 = vpack.c.bf16 %v2266_v27, %v2265_v26 }
 0x7a3   : > { %3979 = vpow2.f32 %v2000_v29  ;;  %v2263_v29 = vld [vmem:[%s4206_s27] sm:$0xff] }
 0x7a4   : > { %3981 = vpow2.f32 %v1998_v30  ;;  %v2264_v30 = vld [vmem:[%s4206_s27 + $0x8] sm:$0xff] }
 0x7ac   : > { %v3978_v31 = vpop.eup %3977 }
 0x7ad   : > { %v2002_v32 = vsel %vm1624_vm5, %v3978_v31, 0.0 }
 0x7ae   : > { %2003 = vadd.xlane.f32.xlu1 %v2002_v32 }
 0x7b0   : > { %v3980_v33 = vpop.eup %3979 }
 0x7b1   : > { %v3982_v34 = vpop.eup %3981  ;;  %v2008_v35 = vsel %vm1631_vm6, %v3980_v33, 0.0 }
 0x7b2   : > { %2009 = vadd.xlane.f32.xlu1 %v2008_v35  ;;  %v2005_v36 = vsel %vm1624_vm5, %v3982_v34, 0.0 }
 0x7b3   : > { %2006 = vadd.xlane.f32.xlu0 %v2005_v36 }
 0x837   : > { %v2004_v37 = vpop.xlane.xlu1 %2003 }
 0x838   : > { %3983 = vrcp.f32 %v2004_v37 }
 0x83b   : > { %v2010_v38 = vpop.xlane.xlu1 %2009 }
 0x83c   : > { %v2007_v40 = vpop.xlane.xlu0 %2006  ;;  %3985 = vrcp.f32 %v2010_v38 }
 0x83d   : > { %3987 = vrcp.f32 %v2007_v40 }
 0x845   : > { %v3984_v41 = vpop.eup %3983 }
 0x846   : > { %v2014_v45 = vmul.f32 %v3984_v41, %v3978_v31  ;;  %v2269_v31 = vpack.c.bf16 %v2264_v30, %v2263_v29 }
 0x849   : > { %v3986_v42 = vpop.eup %3985 }
 0x84a   : > { %v3988_v43 = vpop.eup %3987  ;;  %v2016_v44 = vmul.f32 %v3986_v42, %v3980_v33 }
 0x84b   : > { %v2015_v46 = vmul.f32 %v3988_v43, %v3982_v34 }
 0x84c   : > { %v2018_v47 = vpack.c.bf16 %v2016_v44, %v2016_v44  ;;  %v3497_v44 = vld [vmem:[%s4846_s10] ss:$0 sm:$0xff]  ;;  %s4849_s10 = sld [smem:[#allocation13_spill]] }
 0x84d   : > { %v2017_v48 = vpack.c.bf16 %v2015_v46, %v2014_v45 }
 0x84f   : > { %3721 = vmatprep.mubr.msk.bf16.mxu1 %vm1624_vm5, %v2017_v48 }
 0x850   : > { %3722 = vmatmul.mubr.msk.bf16.vlgmr.msra.gmra.mxu1 %vm1624_vm5, %v2018_v47 }
 0x851   : > { %3726 = vmatpush3.bf16.msra.mxu1 %v2083_v3 }
 0x852   : > { %3737 = vmatprep.subr.bf16.mxu1 %v2270_v28 }
 0x910   : > { %v3723_v52 = vpop.f32.mrf.mxu1 }
 0x911   : > { %v2082_v58 = vpack.c.bf16 %v3723_v52, %v3723_v52 }
 0x912   : > { %v2064_v55 = vpop.f32.mrf.mxu1 }
 0x914   : > { %v3724_v53 = vpop.f32.mrf.mxu1 }
 0x916   : > { %v2067_v56 = vpop.f32.mrf.mxu1 }
 0x917   : > { %v2081_v57 = vpack.c.bf16 %v2067_v56, %v2064_v55 }
 0x919   : > { %3727 = vmatprep.mubr.msk.bf16.mxu1 %vm1560_vm3, %v2081_v57 }
 0x91a   : > { %3728 = vmatmul.mubr.msk.bf16.vlgmr.msra.gmra.mxu1 %vm1560_vm3, %v2082_v58 }
 0x91b   : > { %3738 = vmatpush3.bf16.msra.mxu1 %v2270_v28 }
 0x91c   : > { %3739 = vmatprep.subr.bf16.mxu1 %v2269_v31 }
 0x91f   : > { %3740 = vmatpush3.bf16.msra.mxu1 %v2269_v31 }
 0x9da   : > { %v3729_v61 = vpop.f32.mrf.mxu1 }
 0x9db   : > { %v2187_v60 = vadd.f32 %v3735_v17, %v3729_v61  ;;  %v2365_v61 = vld [vmem:[%s4848_s7 + $0x30] sm:$0xff] }
 0x9dc   : > { %v2124_v63 = vpop.f32.mrf.mxu1 }
 0x9dd   : > { %v2179_v0 = vadd.f32 %v2178_v20, %v2124_v63  ;;  %v2200_v2 = vadd.f32 %v3496_v62, %v2187_v60  ;;  %v2366_v60 = vld [vmem:[%s4848_s7 + $0x38] sm:$0xff]  ;;  %v2363_v63 = vld [vmem:[%s4848_s7 + $0x20] sm:$0xff] }
 0x9de   : > { %v3730_v1 = vpop.f32.mrf.mxu1 }
 0x9df   : > { %v2198_v4 = vadd.f32 %v3496_v62, %v2179_v0  ;;  %v2203_v11 = vadd.f32 %v2200_v2, %v4434_v59  ;;  %v2364_v0 = vld [vmem:[%s4848_s7 + $0x28] sm:$0xff]  ;;  %v2361_v2 = vld [vmem:[%s4848_s7 + $0x10] sm:$0xff] }
 0x9e0   : > { %v2127_v6 = vpop.f32.mrf.mxu1  ;;  %v2371_v1 = vpack.c.bf16 %v2364_v0, %v2363_v63 }
 0x9e1   : > { %v4547_v7 = vadd.f32 %v2198_v4, %v4424_v49  ;;  %v2182_v8 = vadd.f32 %v2181_v5, %v2127_v6  ;;  %v2212_v14 = vsel %vm1311_vm2, %v2203_v11, 0.0  ;;  %v2362_v4 = vld [vmem:[%s4848_s7 + $0x18] sm:$0xff]  ;;  %v2359_v6 = vld [vmem:[%s4848_s7] sm:$0xff] }
 0x9e2   : > { %v2370_v5 = vpack.c.bf16 %v2362_v4, %v2361_v2 }
 0x9e3   : > { %v2199_v9 = vadd.f32 %v3496_v62, %v2182_v8  ;;  %v2206_v10 = vsel %vm1304_vm1, %v4547_v7, 0.0  ;;  %v2372_v62 = vpack.c.bf16 %v2366_v60, %v2365_v61  ;;  %v2360_v8 = vld [vmem:[%s4848_s7 + $0x8] sm:$0xff]  ;;  %s3444_s7 = sshll.u32 %s4378_s18, 3  ;;  %s4860_s18 = sld [smem:[#allocation24_spill]] }
 0x9e4   : > { %2207 = vadd.xlane.f32.xlu0 %v2206_v10  ;;  %v3499_v10 = vld [vmem:[%s4849_s10] ss:$0 sm:$0xff]  ;;  %s4851_s10 = sld [smem:[#allocation18_spill]]  ;;  %s1196_s8 = scalar_lea.vmem %s4855_s6, %s3444_s7 }
 0x9e5   : > { %v2202_v12 = vadd.f32 %v2199_v9, %v4429_v54  ;;  %3745 = vmatprep.subr.bf16.mxu0 %v2372_v62  ;;  %v2369_v9 = vpack.c.bf16 %v2360_v8, %v2359_v6  ;;  %s4859_s6 = sld [smem:[#allocation23_spill]] }
 0x9e6   : > { %3746 = vmatpush3.bf16.msra.mxu0 %v2372_v62  ;;  %v4115_v62 = vmov 0.0   ;;  %s4861_s7 = sld [smem:[#allocation28_spill]] }
 0x9e7   : > { %v2209_v13 = vsel %vm1304_vm1, %v2202_v12, 0.0  ;;  %3747 = vmatprep.subr.bf16.mxu0 %v2371_v1  ;;  %3757 = vmatprep.subr.bf16.mxu1 %v4115_v62 }
 0x9e8   : > { %2210 = vadd.xlane.f32.xlu1 %v2209_v13  ;;  %2213 = vadd.xlane.f32.xlu0 %v2212_v14 }
 0x9ea   : > { %3748 = vmatpush3.bf16.msra.mxu0 %v2371_v1  ;;  %v2468_v61 = vld [vmem:[%s4851_s10 + $0x18] sm:$0xff]  ;;  %v2466_v63 = vld [vmem:[%s4851_s10 + $0x8] sm:$0xff] }
 0x9eb   : > { %3749 = vmatprep.subr.bf16.mxu0 %v2370_v5 }
 0x9ee   : > { %3750 = vmatpush3.bf16.msra.mxu0 %v2370_v5 }
 0x9ef   : > { %3751 = vmatprep.subr.bf16.mxu0 %v2369_v9 }
 0x9f2   : > { %3752 = vmatpush3.bf16.msra.mxu0 %v2369_v9  ;;  %v3506_v9 = vld [vmem:[%s4853_s3] ss:$0 sm:$0xff]  ;;  %s4857_s3 = sld [smem:[#allocation19_spill]] }
 0x9f3   : > { %3773 = vmatprep.subr.bf16.mxu0 %v4115_v62 }
 0xa6d   : > { %v2208_v39 = vpop.xlane.xlu0 %2207 }
 0xa6e   : > { %v2215_v15 = vmul.f32 0.03125, %v2208_v39 }
 0xa70   : > { %v2218_v49 = vsub.f32 %v4547_v7, %v2215_v15 }
 0xa71   : > { %v2211_v16 = vpop.xlane.xlu1 %2210  ;;  %v2214_v17 = vpop.xlane.xlu0 %2213 }
 0xa72   : > { %v2216_v18 = vmul.f32 0.03125, %v2211_v16  ;;  %v2217_v59 = vmul.f32 0.03125, %v2214_v17  ;;  %v2221_v19 = vmul.f32 %v2218_v49, %v2218_v49 }
 0xa74   : > { %v2219_v54 = vsub.f32 %v2202_v12, %v2216_v18  ;;  %v2220_v20 = vsub.f32 %v2203_v11, %v2217_v59  ;;  %v2224_v21 = vsel %vm1304_vm1, %v2221_v19, 0.0 }
 0xa75   : > { %2225 = vadd.xlane.f32.xlu1 %v2224_v21 }
 0xa76   : > { %v2222_v22 = vmul.f32 %v2219_v54, %v2219_v54  ;;  %v2223_v23 = vmul.f32 %v2220_v20, %v2220_v20 }
 0xa78   : > { %v2227_v24 = vsel %vm1304_vm1, %v2222_v22, 0.0  ;;  %v2230_v25 = vsel %vm1311_vm2, %v2223_v23, 0.0 }
 0xa79   : > { %2228 = vadd.xlane.f32.xlu0 %v2227_v24  ;;  %2231 = vadd.xlane.f32.xlu1 %v2230_v25 }
 0xafe   : > { %v2226_v32 = vpop.xlane.xlu1 %2225 }
 0xaff   : > { %v2233_v33 = vmul.f32 0.03125, %v2226_v32 }
 0xb01   : > { %v2236_v34 = vadd.f32 1e-06, %v2233_v33 }
 0xb02   : > { %v2232_v35 = vpop.xlane.xlu1 %2231  ;;  %v2229_v36 = vpop.xlane.xlu0 %2228 }
 0xb03   : > { %3989 = vrsqrt.f32 %v2236_v34  ;;  %v2235_v37 = vmul.f32 0.03125, %v2232_v35  ;;  %v2234_v38 = vmul.f32 0.03125, %v2229_v36 }
 0xb05   : > { %v2238_v40 = vadd.f32 1e-06, %v2235_v37  ;;  %v2237_v41 = vadd.f32 1e-06, %v2234_v38 }
 0xb07   : > { %3991 = vrsqrt.f32 %v2238_v40 }
 0xb08   : > { %3993 = vrsqrt.f32 %v2237_v41 }
 0xb10   : > { %v3990_v42 = vpop.eup %3989 }
 0xb11   : > { %v2242_v43 = vmul.f32 %v3990_v42, %v2218_v49 }
 0xb13   : > { %v2251_v50 = vmul.f32 %v3497_v44, %v2242_v43 }
 0xb14   : > { %v3992_v45 = vpop.eup %3991 }
 0xb15   : > { %v3994_v46 = vpop.eup %3993  ;;  %v2244_v47 = vmul.f32 %v3992_v45, %v2220_v20  ;;  %v2260_v53 = vadd.f32 %v3498_v51, %v2251_v50 }
 0xb16   : > { %v2243_v48 = vmul.f32 %v3994_v46, %v2219_v54  ;;  %v3504_v46 = vld [vmem:[%s4850_s1] ss:$0 sm:$0xff]  ;;  %s4852_s1 = sld [smem:[#allocation16_spill]] }
 0xb17   : > { %v2253_v3 = vmul.f32 %v3497_v44, %v2244_v47 }
 0xb18   : > { %v2252_v52 = vmul.f32 %v3497_v44, %v2243_v48 }
 0xb19   : > { %v2262_v55 = vadd.f32 %v3498_v51, %v2253_v3 }
 0xb1a   : > { %v2261_v56 = vadd.f32 %v3498_v51, %v2252_v52 }
 0xb1b   : > { %v2268_v57 = vpack.c.bf16 %v2262_v55, %v2262_v55 }
 0xb1c   : > { %v2267_v58 = vpack.c.bf16 %v2261_v56, %v2260_v53  ;;  %v3505_v6 = vld [vmem:[%s4852_s1] ss:$0 sm:$0xff]  ;;  %s4862_s1 = sld [smem:[#allocation25_spill]] }
 0xb1e   : > { %3741 = vmatprep.mubr.msk.bf16.mxu1 %vm1304_vm1, %v2267_v58  ;;  %v2467_v58 = vld [vmem:[%s4851_s10 + $0x10] sm:$0xff] }
 0xb1f   : > { %3742 = vmatmul.mubr.msk.bf16.vlgmr.msra.gmra.mxu1 %vm1304_vm1, %v2268_v57  ;;  %v2471_v60 = vpack.c.bf16 %v2468_v61, %v2467_v58 }
 0xb20   : > { %3761 = vmatprep.mubr.msk.bf16.mxu1 %vm4116_vm7, %v4115_v62 }
 0xb21   : > { %3758 = vmatpush3.bf16.msra.mxu1 %v2471_v60 }
 0xb22   : > { %3759 = vmatprep.subr.bf16.mxu1 %v4115_v62 }
 0xbdf   : > { %v3743_v11 = vpop.f32.mrf.mxu1 }
 0xbe0   : > { %v2327_v12 = vadd.f32 %v3743_v11, %v3499_v10  ;;  %v2518_v11 = vld [vmem:[%s4854_s5 + $0x10] sm:$0xff] }
 0xbe1   : > { %v2318_v13 = vpop.f32.mrf.mxu1 }
 0xbe2   : > { %v2334_v14 = vmul.f32 %v2327_v12, %v2327_v12  ;;  %v2319_v39 = vadd.f32 %v3499_v10, %v2318_v13 }
 0xbe3   : > { %v3744_v15 = vpop.f32.mrf.mxu1 }
 0xbe4   : > { %v2337_v49 = vmul.f32 %v2334_v14, %v2327_v12  ;;  %v2332_v16 = vmul.f32 %v2319_v39, %v2319_v39  ;;  %v2516_v15 = vld [vmem:[%s4854_s5] sm:$0xff] }
 0xbe5   : > { %v2321_v17 = vpop.f32.mrf.mxu1 }
 0xbe6   : > { %v2340_v18 = vmul.f32 0.044715, %v2337_v49  ;;  %v2335_v59 = vmul.f32 %v2332_v16, %v2319_v39  ;;  %v2322_v19 = vadd.f32 %v3499_v10, %v2321_v17  ;;  %v2517_v49 = vld [vmem:[%s4854_s5 + $0x8] sm:$0xff]  ;;  %v2463_v17 = vld [vmem:[%s1196_s8] sm:$0xff]  ;;  %s4858_s8 = sld [smem:[#allocation22_spill]] }
 0xbe7   : > { %v2521_v16 = vpack.c.bf16 %v2517_v49, %v2516_v15  ;;  %v3520_v49 = vld [vmem:[%s4854_s5 + $0x20] sm:$0xff] }
 0xbe8   : > { %v2343_v54 = vadd.f32 %v2340_v18, %v2327_v12  ;;  %v2338_v20 = vmul.f32 0.044715, %v2335_v59  ;;  %v2333_v21 = vmul.f32 %v2322_v19, %v2322_v19  ;;  %v4613_v18 = vpack.c.bf16 %v2463_v17, %v2463_v17 }
 0xbea   : > { %v2346_v22 = vmul.f32 0.7978846, %v2343_v54  ;;  %v2341_v23 = vadd.f32 %v2338_v20, %v2319_v39  ;;  %v2336_v24 = vmul.f32 %v2333_v21, %v2322_v19  ;;  %v3508_v21 = vld [vmem:[%s4856_s13] ss:$0 sm:$0xff] }
 0xbec   : > { %3995 = vtanh.f32 %v2346_v22  ;;  %v2344_v25 = vmul.f32 0.7978846, %v2341_v23  ;;  %v2339_v26 = vmul.f32 0.044715, %v2336_v24 }
 0xbee   : > { %3997 = vtanh.f32 %v2344_v25  ;;  %v2342_v27 = vadd.f32 %v2339_v26, %v2322_v19  ;;  %v2472_v26 = vld [vmem:[%s4857_s3] sm:$0x1] }
 0xbf0   : > { %v2345_v28 = vmul.f32 0.7978846, %v2342_v27 }
 0xbf2   : > { %3999 = vtanh.f32 %v2345_v28 }
 0xbf9   : > { %v3996_v29 = vpop.eup %3995 }
 0xbfa   : > { %v2352_v31 = vadd.f32 1.0, %v3996_v29 }
 0xbfb   : > { %v3998_v30 = vpop.eup %3997 }
 0xbfc   : > { %v2350_v32 = vadd.f32 1.0, %v3998_v30  ;;  %v2355_v34 = vmul.f32 0.5, %v2352_v31  ;;  %v3516_v31 = vld [vmem:[%s4851_s10 + $0x30] sm:$0xff] }
 0xbfe   : > { %v2353_v35 = vmul.f32 0.5, %v2350_v32  ;;  %v2358_v38 = vmul.f32 %v2355_v34, %v2327_v12  ;;  %v2519_v12 = vld [vmem:[%s4854_s5 + $0x18] sm:$0xff] }
 0xbff   : > { %v4000_v33 = vpop.eup %3999  ;;  %v2522_v14 = vpack.c.bf16 %v2519_v12, %v2518_v11  ;;  %v3517_v32 = vld [vmem:[%s4851_s10 + $0x38] sm:$0xff] }
 0xc00   : > { %v2351_v36 = vadd.f32 1.0, %v4000_v33  ;;  %v2356_v40 = vmul.f32 %v2353_v35, %v2319_v39  ;;  %v2368_v43 = vpack.c.bf16 %v2358_v38, %v2358_v38  ;;  %v2747_v33 = vpack.c.bf16 %v3517_v32, %v3516_v31  ;;  %v3514_v35 = vld [vmem:[%s4851_s10 + $0x20] sm:$0xff]  ;;  %v2575_v38 = vld [vmem:[%s4858_s8 + $0x10] sm:$0xff] }
 0xc01   : > { %v3529_v32 = vld [vmem:[%s4858_s8 + $0x30] sm:$0xff] }
 0xc02   : > { %v2354_v37 = vmul.f32 0.5, %v2351_v36  ;;  %v3515_v36 = vld [vmem:[%s4851_s10 + $0x28] sm:$0xff] }
 0xc04   : > { %v2357_v41 = vmul.f32 %v2354_v37, %v2322_v19  ;;  %v2746_v37 = vpack.c.bf16 %v3515_v36, %v3514_v35  ;;  %v3528_v36 = vld [vmem:[%s4858_s8 + $0x28] sm:$0xff] }
 0xc06   : > { %v2367_v42 = vpack.c.bf16 %v2357_v41, %v2356_v40  ;;  %v2576_v40 = vld [vmem:[%s4858_s8 + $0x18] sm:$0xff]  ;;  %v2573_v41 = vld [vmem:[%s4858_s8] sm:$0xff] }
 0xc08   : > { %3753 = vmatprep.mubr.msk.bf16.mxu0 %vm1247_vm0, %v2367_v42  ;;  %v2578_v42 = vpack.c.bf16 %v2576_v40, %v2575_v38 }
 0xc09   : > { %3754 = vmatmul.mubr.msk.bf16.vlgmr.msra.gmra.mxu0 %vm1247_vm0, %v2368_v43  ;;  %v2574_v43 = vld [vmem:[%s4858_s8 + $0x8] sm:$0xff] }
 0xc0a   : > { %3777 = vmatprep.mubr.msk.bf16.mxu0 %vm4116_vm7, %v4115_v62  ;;  %3774 = vmatpush3.bf16.msra.mxu0 %v2578_v42 }
 0xc0b   : > { %3775 = vmatprep.subr.bf16.mxu0 %v4115_v62 }
 0xcc9   : > { %v3755_v44 = vpop.f32.mrf.mxu0 }
 0xcca   : > { %v2577_v44 = vpack.c.bf16 %v2574_v43, %v2573_v41 }
 0xccb   : > { %v2413_v45 = vpop.f32.mrf.mxu0 }
 0xccc   : > { %v2425_v47 = vadd.f32 %v2413_v45, %v4547_v7  ;;  %v2465_v7 = vld [vmem:[%s4851_s10] sm:$0xff]  ;;  %3776 = vmatpush3.bf16.msra.mxu0 %v2577_v44 }
 0xccd   : > { %v3756_v48 = vpop.f32.mrf.mxu0  ;;  %v2470_v0 = vpack.c.bf16 %v2466_v63, %v2465_v7  ;;  %3787 = vmatprep.subr.bf16.mxu0 %v4115_v62  ;;  %v3510_v7 = vld [vmem:[%s4859_s6] ss:$0 sm:$0xff] }
 0xcce   : > { %v2433_v50 = vadd.f32 %v3504_v46, %v2425_v47 }
 0xccf   : > { %v2416_v51 = vpop.f32.mrf.mxu0  ;;  %3760 = vmatpush3.bf16.msra.mxu1 %v2470_v0  ;;  %3778 = vmatmul.mubr.msk.bf16.vlgmr.msra.gmra.mxu0 %vm1304_vm1, %v4613_v18 }
 0xcd0   : > { %v2436_v3 = vsel %vm1304_vm1, %v2433_v50, 0.0  ;;  %3765 = vmatprep.subr.bf16.mxu1 %v4115_v62  ;;  %3789 = vmatprep.mubr.msk.bf16.mxu0 %vm4116_vm7, %v4115_v62 }
 0xcd1   : > { %2437 = vadd.xlane.f32.xlu0 %v2436_v3 }
 0xd5a   : > { %v2438_v52 = vpop.xlane.xlu0 %2437 }
 0xd5b   : > { %v2439_v55 = vmul.f32 0.03125, %v2438_v52 }
 0xd5d   : > { %v2440_v53 = vsub.f32 %v2433_v50, %v2439_v55 }
 0xd5f   : > { %v2441_v56 = vmul.f32 %v2440_v53, %v2440_v53 }
 0xd61   : > { %v2442_v57 = vsel %vm1304_vm1, %v2441_v56, 0.0 }
 0xd62   : > { %2443 = vadd.xlane.f32.xlu1 %v2442_v57 }
 0xd8f   : > { %v2620_v63 = vpop.f32.mrf.mxu0 }
 0xd90   : > { %v2621_v0 = vadd.f32 %v3510_v7, %v2620_v63  ;;  %v2737_v63 = vld [vmem:[%s4860_s18] sm:$0xff] }
 0xdeb   : > { %v2444_v1 = vpop.xlane.xlu1 %2443 }
 0xdec   : > { %v2445_v2 = vmul.f32 0.03125, %v2444_v1  ;;  %v3779_v1 = vpop.f32.mrf.mxu0 }
 0xdee   : > { %v2446_v4 = vadd.f32 1e-06, %v2445_v2  ;;  %v2688_v2 = vpack.c.bf16 %v2621_v0, %v2621_v0  ;;  %v2738_v0 = vld [vmem:[%s4860_s18 + $0x8] sm:$0xff] }
 0xdf0   : > { %4001 = vrsqrt.f32 %v2446_v4  ;;  %v2623_v4 = vpop.f32.mrf.mxu0 }
 0xdf1   : > { %v2740_v4 = vpack.c.bf16 %v2738_v0, %v2737_v63  ;;  %v3217_v63 = vld [vmem:[%s4306_s12 + $0x8] sm:$0xff] }
 0xdfd   : > { %v4002_v5 = vpop.eup %4001 }
 0xdfe   : > { %v2448_v8 = vmul.f32 %v4002_v5, %v2440_v53  ;;  %v2695_v5 = vsel %vm2693_vm9, %v2688_v2, 0 }
 0xdff   : > { %3788 = vmatpush3.bf16.msra.mxu0 %v2695_v5 }
 0xe00   : > { %v2455_v10 = vmul.f32 %v3505_v6, %v2448_v8  ;;  %v3780_v6 = vpop.f32.mrf.mxu0  ;;  %3801 = vmatprep.subr.bf16.mxu0 %v4115_v62 }
 0xe02   : > { %v4599_v13 = vadd.f32 %v3506_v9, %v2455_v10  ;;  %v3522_v9 = vld [vmem:[%s4854_s5 + $0x30] sm:$0xff]  ;;  %v3523_v10 = vld [vmem:[%s4854_s5 + $0x38] sm:$0xff] }
 0xe04   : > { %v4603_v39 = vpack.c.bf16 %v4599_v13, %v4599_v13 }
 0xe06   : > { %3762 = vmatmul.mubr.msk.bf16.vlgmr.msra.gmra.mxu1 %vm1304_vm1, %v4603_v39 }
 0xe07   : > { %3766 = vmatpush3.bf16.msra.mxu1 %v2522_v14  ;;  %3769 = vmatprep.mubr.msk.bf16.mxu1 %vm4116_vm7, %v4115_v62  ;;  %v2796_v14 = vpack.c.bf16 %v3523_v10, %v3522_v9  ;;  %v3121_v9 = vld [vmem:[%s4861_s7 + $0x18] sm:$0xff] }
 0xe08   : > { %3767 = vmatprep.subr.bf16.mxu1 %v4115_v62 }
 0xe0b   : > { %3768 = vmatpush3.bf16.msra.mxu1 %v2521_v16  ;;  %v3521_v16 = vld [vmem:[%s4854_s5 + $0x28] sm:$0xff]  ;;  %s4865_s5 = sld [smem:[#allocation27_spill]] }
 0xe0c   : > { %3781 = vmatprep.subr.bf16.mxu1 %v4115_v62  ;;  %v2795_v17 = vpack.c.bf16 %v3521_v16, %v3520_v49 }
 0xe0e   : > { %3770 = vmatmul.mubr.msk.bf16.vlgmr.msra.gmra.mxu1 %vm1304_vm1, %v4613_v18 }
 0xe0f   : > { %3783 = vmatprep.mubr.msk.bf16.mxu1 %vm4116_vm7, %v4115_v62 }
 0xec6   : > { %v2510_v59 = vpop.f32.mrf.mxu1 }
 0xec7   : > { %v2511_v30 = vadd.f32 %v2510_v59, %v2472_v26  ;;  %v3518_v26 = vld [vmem:[%s4857_s3 + $0x1] sm:$0x1]  ;;  %s4863_s3 = sld [smem:[#allocation30_spill]] }
 0xec8   : > { %v3763_v19 = vpop.f32.mrf.mxu1 }
 0xec9   : > { %v2626_v34 = vpack.c.bf16 %v2511_v30, %v2511_v30 }
 0xeca   : > { %v2513_v54 = vpop.f32.mrf.mxu1 }
 0xecc   : > { %v3764_v20 = vpop.f32.mrf.mxu1 }
 0xece   : > { %v2567_v22 = vpop.f32.mrf.mxu1 }
 0xecf   : > { %v2568_v23 = vadd.f32 %v3508_v21, %v2567_v22  ;;  %v3525_v21 = vld [vmem:[%s4856_s13 + $0x1] ss:$0 sm:$0xff] }
 0xed0   : > { %v3771_v24 = vpop.f32.mrf.mxu1 }
 0xed1   : > { %v2627_v25 = vpack.c.bf16 %v2568_v23, %v2568_v23 }
 0xed2   : > { %v2570_v27 = vpop.f32.mrf.mxu1 }
 0xed3   : > { %v2632_v28 = vsel %vm1560_vm3, %v2627_v25, 0 }
 0xed4   : > { %v3772_v29 = vpop.f32.mrf.mxu1  ;;  %3782 = vmatpush3.bf16.xpose.msra.mxu1 %v2632_v28 }
 0xed5   : > { %3793 = vmatprep.subr.bf16.mxu1 %v4115_v62 }
 0xedb   : > { %3784 = vmatmul.mubr.msk.bf16.vlgmr.msra.gmra.mxu1 %vm1560_vm3, %v2626_v34  ;;  %v3527_v34 = vld [vmem:[%s4858_s8 + $0x20] sm:$0xff] }
 0xedc   : > { %3794 = vmatpush3.bf16.msra.mxu1 %v2747_v33  ;;  %3797 = vmatprep.mubr.msk.bf16.mxu1 %vm4116_vm7, %v4115_v62  ;;  %v3530_v33 = vld [vmem:[%s4858_s8 + $0x38] sm:$0xff] }
 0xedd   : > { %3795 = vmatprep.subr.bf16.mxu1 %v4115_v62  ;;  %v2851_v35 = vpack.c.bf16 %v3530_v33, %v3529_v32 }
 0xee0   : > { %3796 = vmatpush3.bf16.msra.mxu1 %v2746_v37  ;;  %v2850_v37 = vpack.c.bf16 %v3528_v36, %v3527_v34 }
 0xee1   : > { %3809 = vmatprep.subr.bf16.mxu1 %v4115_v62 }
 0xee3   : > { %3798 = vmatmul.mubr.msk.bf16.vlgmr.msra.gmra.mxu1 %vm1304_vm1, %v4603_v39 }
 0xee4   : > { %3813 = vmatprep.mubr.msk.bf16.mxu1 %vm4116_vm7, %v4115_v62  ;;  %3810 = vmatpush3.bf16.msra.mxu1 %v2851_v35 }
 0xee5   : > { %3811 = vmatprep.subr.bf16.mxu1 %v4115_v62 }
 0xee8   : > { %3812 = vmatpush3.bf16.msra.mxu1 %v2850_v37 }
 0xee9   : > { %3823 = vmatprep.subr.bf16.mxu1 %v4115_v62 }
 0xeeb   : > { %3814 = vmatmul.mubr.msk.bf16.vlgmr.msra.gmra.mxu1 %vm1304_vm1, %v4613_v18 }
 0xeec   : > { %3825 = vmatprep.mubr.msk.bf16.mxu1 %vm4116_vm7, %v4115_v62 }
 0xf9b   : > { %v2668_v45 = vpop.f32.mrf.mxu1 }
 0xf9c   : > { %v2674_v46 = vmul.f32 0.25, %v2668_v45  ;;  %v3532_v45 = vld [vmem:[%s4859_s6 + $0x1] ss:$0 sm:$0xff]  ;;  %s4867_s6 = sld [smem:[#allocation31_spill]] }
 0xf9d   : > { %v3785_v47 = vpop.f32.mrf.mxu1 }
 0xf9e   : > { %v2676_v48 = vsel %vm2675_vm8, %v2674_v46, -inf }
 0xf9f   : > { %2677 = vmax.xlane.f32.xlu0 %v2676_v48  ;;  %v2671_v50 = vpop.f32.mrf.mxu1 }
 0xfa1   : > { %v3786_v51 = vpop.f32.mrf.mxu1 }
 0xfa3   : > { %v2784_v3 = vpop.f32.mrf.mxu1 }
 0xfa4   : > { %v2785_v30 = vadd.f32 %v3518_v26, %v2784_v3 }
 0xfa5   : > { %v3799_v52 = vpop.f32.mrf.mxu1 }
 0xfa6   : > { %v2900_v31 = vpack.c.bf16 %v2785_v30, %v2785_v30 }
 0xfa7   : > { %v2787_v55 = vpop.f32.mrf.mxu1 }
 0xfa9   : > { %v3800_v53 = vpop.f32.mrf.mxu1 }
0x1028   : > { %v2678_v56 = vpop.xlane.xlu0 %2677 }
0x1029   : > { %v2679_v57 = vsub.f32 %v2674_v46, %v2678_v56  ;;  %v2894_v46 = vpop.f32.mrf.mxu1 }
0x102a   : > { %v2895_v47 = vadd.f32 %v3532_v45, %v2894_v46  ;;  %v3225_v45 = vld [vmem:[%s4838_s4 + $0x10] sm:$0xff]  ;;  %v3226_v46 = vld [vmem:[%s4838_s4 + $0x18] sm:$0xff] }
0x102b   : > { %v2680_v58 = vmul.f32 1.442695, %v2679_v57  ;;  %v3815_v48 = vpop.f32.mrf.mxu1 }
0x102c   : > { %v2961_v50 = vpack.c.bf16 %v2895_v47, %v2895_v47  ;;  %v3229_v47 = vpack.c.bf16 %v3226_v46, %v3225_v45 }
0x102d   : > { %4003 = vpow2.f32 %v2680_v58  ;;  %v2897_v51 = vpop.f32.mrf.mxu1  ;;  %v3536_v58 = vld [vmem:[%s4860_s18 + $0x10] sm:$0xff] }
0x102f   : > { %v3816_v3 = vpop.f32.mrf.mxu1 }
0x103a   : > { %v4004_v61 = vpop.eup %4003 }
0x103b   : > { %v2682_v60 = vsel %vm2675_vm8, %v4004_v61, 0.0 }
0x103c   : > { %2683 = vadd.xlane.f32.xlu1 %v2682_v60 }
0x10c5   : > { %v2684_v8 = vpop.xlane.xlu1 %2683 }
0x10c6   : > { %4005 = vrcp.f32 %v2684_v8  ;;  %v3120_v8 = vld [vmem:[%s4861_s7 + $0x10] sm:$0xff] }
0x10d3   : > { %v4006_v11 = vpop.eup %4005 }
0x10d4   : > { %v2686_v12 = vmul.f32 %v4006_v11, %v4004_v61  ;;  %v3537_v61 = vld [vmem:[%s4860_s18 + $0x18] sm:$0xff]  ;;  %v3123_v11 = vpack.c.bf16 %v3121_v9, %v3120_v8  ;;  %v3172_v9 = vld [vmem:[%s4867_s6] sm:$0x1] }
0x10d5   : > { %v3012_v60 = vpack.c.bf16 %v3537_v61, %v3536_v58 }
0x10d6   : > { %v2687_v15 = vpack.c.bf16 %v2686_v12, %v2686_v12 }
0x10d8   : > { %3790 = vmatmul.mubr.msk.bf16.vlgmr.msra.gmra.mxu0 %vm2689_vm10, %v2687_v15  ;;  %v3119_v15 = vld [vmem:[%s4861_s7 + $0x8] sm:$0xff] }
0x10d9   : > { %3802 = vmatpush3.bf16.msra.mxu0 %v2796_v14  ;;  %3805 = vmatprep.mubr.msk.bf16.mxu0 %vm4116_vm7, %v4115_v62  ;;  %v3118_v14 = vld [vmem:[%s4861_s7] sm:$0xff] }
0x10da   : > { %3803 = vmatprep.subr.bf16.mxu0 %v4115_v62 }
0x10dd   : > { %3804 = vmatpush3.bf16.msra.mxu0 %v2795_v17  ;;  %v3122_v17 = vpack.c.bf16 %v3119_v15, %v3118_v14 }
0x10de   : > { %3817 = vmatprep.subr.bf16.mxu0 %v4115_v62 }
0x10e0   : > { %3806 = vmatmul.mubr.msk.bf16.vlgmr.msra.gmra.mxu0 %vm1304_vm1, %v4613_v18  ;;  %v2966_v18 = vsel %vm2693_vm9, %v2961_v50, 0 }
0x10e1   : > { %3819 = vmatprep.mubr.msk.bf16.mxu0 %vm4116_vm7, %v4115_v62  ;;  %3824 = vmatpush3.bf16.msra.mxu1 %v2966_v18 }
0x10e2   : > { %3835 = vmatprep.subr.bf16.mxu1 %v4115_v62 }
0x1198   : > { %v4665_v59 = vpop.f32.mrf.mxu0 }
0x1199   : > { %v2739_v6 = vpack.c.bf16 %v4665_v59, %v4665_v59 }
0x119a   : > { %v3791_v19 = vpop.f32.mrf.mxu0 }
0x119c   : > { %v2734_v54 = vpop.f32.mrf.mxu0 }
0x119e   : > { %v3792_v20 = vpop.f32.mrf.mxu0 }
0x11a0   : > { %v2839_v22 = vpop.f32.mrf.mxu0 }
0x11a1   : > { %v2840_v23 = vadd.f32 %v3525_v21, %v2839_v22  ;;  %v2464_v22 = vld [vmem:[%s4862_s1] sm:$0x1]  ;;  %s4864_s1 = sld [smem:[#allocation26_spill]] }
0x11a2   : > { %v3807_v24 = vpop.f32.mrf.mxu0 }
0x11a3   : > { %v2901_v25 = vpack.c.bf16 %v2840_v23, %v2840_v23 }
0x11a4   : > { %v2842_v27 = vpop.f32.mrf.mxu0 }
0x11a5   : > { %v2906_v28 = vsel %vm1560_vm3, %v2901_v25, 0 }
0x11a6   : > { %v3808_v29 = vpop.f32.mrf.mxu0  ;;  %3818 = vmatpush3.bf16.xpose.msra.mxu0 %v2906_v28 }
0x11a7   : > { %3829 = vmatprep.subr.bf16.mxu0 %v4115_v62  ;;  %v3101_v3 = vld [vmem:[%s4864_s1] sm:$0x1] }
0x11ad   : > { %3820 = vmatmul.mubr.msk.bf16.vlgmr.msra.gmra.mxu0 %vm1560_vm3, %v2900_v31 }
0x11ae   : > { %3831 = vmatprep.mubr.msk.bf16.mxu0 %vm4116_vm7, %v4115_v62  ;;  %3830 = vmatpush3.bf16.msra.mxu0 %v3012_v60 }
0x11af   : > { %3841 = vmatprep.subr.bf16.mxu0 %v4115_v62 }
0x126d   : > { %v2942_v38 = vpop.f32.mrf.mxu0 }
0x126e   : > { %v2948_v40 = vmul.f32 0.25, %v2942_v38 }
0x126f   : > { %v3821_v41 = vpop.f32.mrf.mxu0 }
0x1270   : > { %v2949_v42 = vsel %vm2675_vm8, %v2948_v40, -inf }
0x1271   : > { %2950 = vmax.xlane.f32.xlu0 %v2949_v42  ;;  %v2945_v43 = vpop.f32.mrf.mxu0  ;;  %v3165_v42 = vld [vmem:[%s4863_s3] sm:$0xff] }
0x1272   : > { %v3166_v43 = vld [vmem:[%s4863_s3 + $0x8] sm:$0xff] }
0x1273   : > { %v3822_v44 = vpop.f32.mrf.mxu0 }
0x1274   : > { %v3170_v44 = vpack.c.bf16 %v3166_v43, %v3165_v42 }
0x12fa   : > { %v2951_v52 = vpop.xlane.xlu0 %2950 }
0x12fb   : > { %v2952_v55 = vsub.f32 %v2948_v40, %v2951_v52  ;;  %v3168_v40 = vld [vmem:[%s4863_s3 + $0x18] sm:$0xff] }
0x12fd   : > { %v2953_v53 = vmul.f32 1.442695, %v2952_v55  ;;  %v3102_v55 = vld [vmem:[%s4865_s5] sm:$0x1]  ;;  %s1186_s5 = sand.u32 1, %s4065_s23  }
0x12fe   : > { %s1187_s1 = scalar_lea.vmem [#allocation2], %s1186_s5  ;;  %s3321_s7 = scalar_lea.sflag [#allocation3], %s1186_s5 }
0x12ff   : > { %4007 = vpow2.f32 %v2953_v53  ;;  %s3333_s6 = sshll.u32 %s1187_s1, 4  ;;  %s4751_s6 = int_to_ptr.vmem [resolvable:$true] %s3333_s6 }
0x1300   : > { %s4013_s8 = scalar_lea.vmem %s4751_s6, 16 }
0x1301   : > { %p4014_p11 = scmp.ne.s32.totalorder %s4751_s6, %s4013_s8 }
0x1303   : > { %p4015_p12 = pnand %p4014_p11, %p4361_p5 }
0x1305   : > { %p4016_p13 = pneg %p4015_p12 }
0x130c   : > { %v4008_v56 = vpop.eup %4007 }
0x130d   : > { %v2955_v57 = vsel %vm2675_vm8, %v4008_v56, 0.0 }
0x130e   : > { %2956 = vadd.xlane.f32.xlu1 %v2955_v57  ;;  %v3219_v57 = vld [vmem:[%s4306_s12 + $0x18] sm:$0xff] }
0x1397   : > { %v2957_v7 = vpop.xlane.xlu1 %2956 }
0x1398   : > { %4009 = vrcp.f32 %v2957_v7  ;;  %v3216_v7 = vld [vmem:[%s4306_s12] sm:$0xff] }
0x13a5   : > { %v4010_v1 = vpop.eup %4009 }
0x13a6   : > { %v2959_v2 = vmul.f32 %v4010_v1, %v4008_v56  ;;  %v3218_v56 = vld [vmem:[%s4306_s12 + $0x10] sm:$0xff]  ;;  %v3221_v1 = vpack.c.bf16 %v3217_v63, %v3216_v7 }
0x13a7   : > { %v3222_v61 = vpack.c.bf16 %v3219_v57, %v3218_v56 }
0x13a8   : > { %v2960_v5 = vpack.c.bf16 %v2959_v2, %v2959_v2 }
0x13aa   : > { %3826 = vmatmul.mubr.msk.bf16.vlgmr.msra.gmra.mxu1 %vm2689_vm10, %v2960_v5  ;;  %v3223_v5 = vld [vmem:[%s4838_s4] sm:$0xff] }
0x13ab   : > { %3836 = vmatpush3.bf16.msra.mxu1 %v2740_v4  ;;  %3837 = vmatprep.mubr.msk.bf16.mxu1 %vm4116_vm7, %v4115_v62 }
0x13ac   : > { %3849 = vmatprep.subr.bf16.mxu1 %v4115_v62 }
0x13b2   : > { %3838 = vmatmul.mubr.msk.bf16.vlgmr.msra.gmra.mxu1 %vm1560_vm3, %v2739_v6  ;;  %v3224_v6 = vld [vmem:[%s4838_s4 + $0x8] sm:$0xff] }
0x13b3   : > { %3853 = vmatprep.mubr.msk.bf16.mxu1 %vm4116_vm7, %v4115_v62  ;;  %v3228_v8 = vpack.c.bf16 %v3224_v6, %v3223_v5 }
0x146a   : > { %v3002_v10 = vpop.f32.mrf.mxu1 }
0x146b   : > { %v3011_v12 = vpack.c.bf16 %v3002_v10, %v3002_v10 }
0x146c   : > { %v3827_v49 = vpop.f32.mrf.mxu1 }
0x146d   : > { %3832 = vmatmul.mubr.msk.bf16.vlgmr.msra.gmra.mxu0 %vm1560_vm3, %v3011_v12 }
0x146e   : > { %v3005_v16 = vpop.f32.mrf.mxu1  ;;  %3842 = vmatpush3.bf16.msra.mxu0 %v3123_v11  ;;  %3845 = vmatprep.mubr.msk.bf16.mxu0 %vm4116_vm7, %v4115_v62 }
0x146f   : > { %3843 = vmatprep.subr.bf16.mxu0 %v4115_v62 }
0x1470   : > { %v3828_v59 = vpop.f32.mrf.mxu1 }
0x1472   : > { %v3093_v19 = vpop.f32.mrf.mxu1  ;;  %3844 = vmatpush3.bf16.msra.mxu0 %v3122_v17 }
0x1473   : > { %3857 = vmatprep.subr.bf16.mxu0 %v4115_v62 }
0x1474   : > { %v3839_v54 = vpop.f32.mrf.mxu1 }
0x1475   : > { %3846 = vmatmul.mubr.msk.bf16.vlgmr.msra.gmra.mxu0 %vm1304_vm1, %v4603_v39  ;;  %v3316_v54 = vld [vmem:[%s4868_s9] sm:$0x1] }
0x1476   : > { %v3096_v20 = vpop.f32.mrf.mxu1  ;;  %3861 = vmatprep.mubr.msk.bf16.mxu0 %vm4116_vm7, %v4115_v62  ;;  %3858 = vmatpush3.bf16.msra.mxu0 %v3229_v47 }
0x1477   : > { %3859 = vmatprep.subr.bf16.mxu0 %v4115_v62 }
0x1478   : > { %v3840_v21 = vpop.f32.mrf.mxu1 }
0x147a   : > { %3860 = vmatpush3.bf16.msra.mxu0 %v3228_v8 }
0x152d   : > { %v3050_v23 = vpop.f32.mrf.mxu0 }
0x152e   : > { %v3094_v24 = vadd.f32 %v3093_v19, %v3050_v23 }
0x152f   : > { %v3833_v25 = vpop.f32.mrf.mxu0 }
0x1530   : > { %v3099_v26 = vadd.f32 %v3094_v24, %v2464_v22 }
0x1531   : > { %v3053_v27 = vpop.f32.mrf.mxu0 }
0x1532   : > { %v3100_v28 = vadd.f32 %v3099_v26, %v4599_v13  ;;  %v3167_v13 = vld [vmem:[%s4863_s3 + $0x10] sm:$0xff]  ;;  %s4866_s3 = sld [smem:[#allocation29_spill]] }
0x1533   : > { %v3834_v29 = vpop.f32.mrf.mxu0  ;;  %v3171_v41 = vpack.c.bf16 %v3168_v40, %v3167_v13 }
0x1534   : > { %v3103_v30 = vsel %vm1311_vm2, %v3100_v28, 0.0 }
0x1535   : > { %3104 = vadd.xlane.f32.xlu0 %v3103_v30  ;;  %v3159_v39 = vpop.f32.mrf.mxu0  ;;  %3850 = vmatpush3.bf16.msra.mxu1 %v3171_v41 }
0x1536   : > { %3851 = vmatprep.subr.bf16.mxu1 %v4115_v62 }
0x1537   : > { %v3847_v31 = vpop.f32.mrf.mxu0 }
0x1538   : > { %v3124_v0 = vld [vmem:[%s4866_s3] sm:$0x1]  ;;  %s3544_s3 = sshll.u32 %s4344_s0, 4  ;;  %s4117_s0 = smov [#allocation2]  }
0x1539   : > { %v3162_v32 = vpop.f32.mrf.mxu0  ;;  %3852 = vmatpush3.bf16.msra.mxu1 %v3170_v44  ;;  %v3160_v2 = vadd.f32 %v3159_v39, %v3124_v0  ;;  %s4749_s4 = scalar_lea.hbm %s4321_s20, %s3544_s3  ;;  %s4017_s9 = sshll.u32 %s4117_s0, 4  ;;  %s4018_s9 = int_to_ptr.vmem [resolvable:$false] %s4017_s9 }
0x153a   : > { %3865 = vmatprep.subr.bf16.mxu1 %v4115_v62  ;;  %s4019_s10 = scalar_lea.vmem %s4018_s9, 32  ;;  %p4020_p0 = scmp.lt.s32.totalorder %s4751_s6, %s4018_s9 }
0x153b   : > { %v3848_v33 = vpop.f32.mrf.mxu0  ;;  %v3220_v4 = vpack.c.bf16 %v3160_v2, %v3160_v2  ;;  %p4021_p1 = scmp.lt.s32.totalorder %s4019_s10, %s4013_s8 }
0x153d   : > { %p4022_p2 = por %p4021_p1, %p4020_p0 }
0x153f   : > { %p4023_p3 = pnand %p4022_p2, %p4016_p13 }
0x15be   : > { %v3105_v34 = vpop.xlane.xlu0 %3104 }
0x15bf   : > { %v3106_v35 = vmul.f32 0.03125, %v3105_v34 }
0x15c1   : > { %v3107_v36 = vsub.f32 %v3100_v28, %v3106_v35 }
0x15c3   : > { %v3108_v37 = vmul.f32 %v3107_v36, %v3107_v36 }
0x15c5   : > { %v3109_v38 = vsel %vm1311_vm2, %v3108_v37, 0.0 }
0x15c6   : > { %3110 = vadd.xlane.f32.xlu1 %v3109_v38 }
0x164f   : > { %v3111_v48 = vpop.xlane.xlu1 %3110 }
0x1650   : > { %v3112_v50 = vmul.f32 0.03125, %v3111_v48 }
0x1652   : > { %v3113_v51 = vadd.f32 1e-12, %v3112_v50 }
0x1654   : > { %4011 = vrsqrt.f32 %v3113_v51 }
0x1661   : > { %v4012_v18 = vpop.eup %4011 }
0x1662   : > { %v3115_v52 = vmul.f32 %v4012_v18, %v3107_v36 }
0x1664   : > { %v3116_v53 = vmul.f32 %v3115_v52, %v3101_v3 }
0x1666   : > { %v3117_v58 = vadd.f32 %v3116_v53, %v3102_v55 }
0x1668   : > { %v3169_v60 = vpack.c.bf16 %v3117_v58, %v3117_v58 }
0x166a   : > { %3854 = vmatmul.mubr.msk.bf16.vlgmr.msra.gmra.mxu1 %vm1304_vm1, %v3169_v60 }
0x166b   : > { %3866 = vmatpush3.bf16.msra.mxu1 %v3222_v61  ;;  %3869 = vmatprep.mubr.msk.bf16.mxu1 %vm4116_vm7, %v4115_v62 }
0x166c   : > { %3867 = vmatprep.subr.bf16.mxu1 %v4115_v62 }
0x166f   : > { %3868 = vmatpush3.bf16.msra.mxu1 %v3221_v1 }
0x1672   : > { %3870 = vmatmul.mubr.msk.bf16.vlgmr.msra.gmra.mxu1 %vm1304_vm1, %v3220_v4 }
0x172a   : > { %v3210_v10 = vpop.f32.mrf.mxu1 }
0x172b   : > { %v3211_v11 = vadd.f32 %v3210_v10, %v3172_v9 }
0x172c   : > { %v3855_v12 = vpop.f32.mrf.mxu1 }
0x172d   : > { %v3227_v14 = vpack.c.bf16 %v3211_v11, %v3211_v11 }
0x172e   : > { %v3213_v15 = vpop.f32.mrf.mxu1 }
0x172f   : > { %3862 = vmatmul.mubr.msk.bf16.vlgmr.msra.gmra.mxu0 %vm1304_vm1, %v3227_v14 }
0x1730   : > { %v3856_v62 = vpop.f32.mrf.mxu1 }
0x1732   : > { %v3310_v49 = vpop.f32.mrf.mxu1 }
0x1734   : > { %v3871_v16 = vpop.f32.mrf.mxu1 }
0x1736   : > { %v3313_v17 = vpop.f32.mrf.mxu1 }
0x1738   : > { %v3872_v59 = vpop.f32.mrf.mxu1 }
0x17ef   : > { %v3267_v19 = vpop.f32.mrf.mxu0 }
0x17f0   : > { %v3311_v20 = vadd.f32 %v3310_v49, %v3267_v19 }
0x17f1   : > { %v3863_v21 = vpop.f32.mrf.mxu0 }
0x17f2   : > { %v3317_v22 = vadd.f32 %v3316_v54, %v3311_v20 }
0x17f3   : > { %v3270_v23 = vpop.f32.mrf.mxu0 }
0x17f4   : > { %3319 = vst.msk [vmem:[%s1187_s1] sm:$0x1] %vm3318_vm11, %v3317_v22 }
0x17f5   : > { %v3864_v24 = vpop.f32.mrf.mxu0 }
0x17f6   : > { %4026 = shalt.err (!%p4023_p3)
}
0x17f7   : > { %s4027_s5 = scalar_lea.hbm %s4749_s4, 16  ;;  %s4031_s3 = scalar_lea.hbm %s4321_s20, 32 }
0x17f8   : > { %p4028_p4 = scmp.ne.s32.totalorder %s4749_s4, %s4027_s5  ;;  %p4032_p9 = scmp.lt.s32.totalorder %s4749_s4, %s4321_s20 }
0x17f9   : > { %p4033_p10 = scmp.lt.s32.totalorder %s4031_s3, %s4027_s5 }
0x17fa   : > { %p4029_p7 = pnand %p4028_p4, %p4361_p5 }
0x17fb   : > { %p4034_p11 = por %p4033_p10, %p4032_p9 }
0x17fc   : > { %p4030_p8 = pneg %p4029_p7 }
0x17fe   : > { %p4035_p12 = pnand %p4034_p11, %p4030_p8 }
0x1800   : > { %4038 = shalt.err (!%p4035_p12)
}
0x1801   : > { %3878 = dma.vmem_to_hbm [thread:$0]  (%p4361_p5), %s4751_s6, 16, %s4749_s4, %s3321_s7  }
0x1802 PF: > { %p3884_p13 = scmp.ge.s32.totalorder %s4073_s28, 2  ;;  %s3345_s9 = sand.u32 1, %s4061_s22  }
0x1803   : > { %s3346_s10 = scalar_lea.sflag [#allocation3], %s3345_s9 }
0x1804   : > { %p3881_p0 = pnand %p3884_p13, %p4365_p6 }
0x1806   : > { %p3882_p1 = pneg %p3881_p0 }
0x1808   : > { %4056 = dma.done.wait (%p3882_p1), %s3346_s10, 16  }
0x1809   : > { %4058 = vsyncadd (%p3882_p1), %s3346_s10, 4294967280  ;;  %p89_p2 = scmp.ge.s32.totalorder %s4348_s2, 4   ;;  %s4869_s22 = smov %s4065_s23 }
0x180a   : > { %s4870_s23 = smov %s4069_s26  ;;  %s4871_s26 = smov %s4359_s11 }
0x180b   : > { %s4872_s28 = smov %s4348_s2  ;;  %91 = sbr.rel (!%p89_p2) target bundleno = 80 (0x50), region = 267 }
0x1810   :  { %3350 = vsyncpa [#allocation3], 1 }
0x1811   :  { %3352 = vsyncpa [#allocation3 + $0x1], 1 }

</bundles_post_ra>
